<compile_context>
chip_gen: v5e
topology: v5e:2x2
jax: 0.10.0
libtpu: 0.0.40
codegen_flags: <defaults>
</compile_context>

<pallas_src>
import jax
import jax.numpy as jnp
from jax import lax
from jax.experimental import pallas as pl
from jax.experimental.pallas import tpu as pltpu


# --------------------------------------------------------------------------- #
# Kernel
# --------------------------------------------------------------------------- #
def _xcorr_depthwise_kernel(z_ref, x_ref, o_ref, xs_ref):
    """Depthwise cross-correlation, channels-last layout.

    z_ref : (BB, Hz, Wz, C)    template block           (VMEM, input dtype)
    x_ref : (BB, Hx, Wx, C)    search   block           (VMEM, input dtype)
    o_ref : (BB, Ho, Wo, C)    output   block           (VMEM, input dtype)
    xs_ref: (Wz*BB, Hx, Wo, C) f32 scratch, xs[v] = x[:, :, v:v+Wo, :]

    out[b, i, j, c] = sum_{u, v} z[b, u, v, c] * x[b, i + u, j + v, c]
    """
    BB, Hz, Wz, C = z_ref.shape
    _, Ho, Wo, _ = o_ref.shape

    # (1) Pre-shift + pre-convert the search block ONCE per grid step.  These
    # are the only sublane-misaligned reads in the kernel (Wz of them, instead
    # of Hz*Wz*row_chunks per-tap misaligned slices), and the one-time f32
    # cast removes the per-tap convert from the VALU-bound inner loop.
    for v in range(Wz):
        xs_ref[v * BB:(v + 1) * BB] = x_ref[:, :, v:v + Wo, :].astype(jnp.float32)

    # (2) Template taps: load + cast the whole (small) z block once, and hoist
    # the per-tap slices out of the row-chunk loop (JAX does not CSE them).
    z32 = z_ref[...].astype(jnp.float32)                       # (BB,Hz,Wz,C)
    z_taps = [[z32[:, u:u + 1, v:v + 1, :] for v in range(Wz)]
              for u in range(Hz)]                               # (BB,1,1,C)

    # (3) Row-chunked f32 accumulation.  Chunk sized so acc + the streamed x
    # window + the product temp stay within the 64-vreg file (no spills onto
    # the vld/vst slots).  TODO(synk): sweep 8K/16K/24K/32K on real shapes.
    max_acc_elems = 16 * 1024
    row_chunk = max(1, min(Ho, max_acc_elems // max(1, BB * Wo * C)))

    for r0 in range(0, Ho, row_chunk):
        rows = min(row_chunk, Ho - r0)
        acc = jnp.zeros((BB, rows, Wo, C), jnp.float32)
        # Static Python loops over the small template extent -> fully unrolled
        # f32 multiply-adds; all slices are static and aligned (the u / r0
        # shifts index the outer H axis, never the sublane/lane axes).
        for u in range(Hz):
            for v in range(Wz):
                xt = xs_ref[v * BB:(v + 1) * BB, r0 + u:r0 + u + rows, :, :]
                acc = acc + z_taps[u][v] * xt
        o_ref[:, r0:r0 + rows, :, :] = acc.astype(o_ref.dtype)


# --------------------------------------------------------------------------- #
# Wrapper helpers
# --------------------------------------------------------------------------- #
def _vmem_capacity_bytes():
    """Physical VMEM per TensorCore (generation-aware), with a safe fallback."""
    try:
        cap = getattr(pltpu.get_tpu_info(), "vmem_capacity_bytes", None)
        if cap:
            return int(cap)
    except Exception:
        pass
    return 64 << 20          # conservative: v7x per-TC VMEM


def _pick_channel_block(C):
    # Channels are independent in a depthwise xcorr, so they make a clean
    # second "parallel" grid axis.  Keep the lane axis dense: 128-wide blocks
    # when C allows; otherwise take all of C.
    if C > 128 and C % 128 == 0:
        return 128
    return C


def _pad_to(n, m):
    return ((n + m - 1) // m) * m


# --------------------------------------------------------------------------- #
# Public entry points
# --------------------------------------------------------------------------- #
def rpn_xcorr_depthwise_nhwc(z_cl, x_cl):
    """Depthwise xcorr of x (search) with z (template), channels-last.

    z_cl: (B, Hz, Wz, C), x_cl: (B, Hx, Wx, C) -> (B, Ho, Wo, C) with
    Ho = Hx - Hz + 1, Wo = Wx - Wz + 1.

    Layout note: C rides the 128-wide lane axis, so C should ideally be a
    multiple of 128 (typical RPN heads use C=256).  With C < 128 (like the
    tiny demo below) the kernel runs at C/128 lane utilization.
    TODO(synk): for C < 128, fold batch or W columns into the lane axis.
    """
    B, Hz, Wz, C = z_cl.shape
    Bx, Hx, Wx, Cx = x_cl.shape
    assert B == Bx and C == Cx, "template/search must share batch and channels"
    assert Hz <= Hx and Wz <= Wx, "template must be no larger than search feature"
    if not (jnp.issubdtype(z_cl.dtype, jnp.floating)
            and jnp.issubdtype(x_cl.dtype, jnp.floating)):
        raise TypeError("rpn_xcorr_depthwise expects floating-point features")
    z_cl = z_cl.astype(x_cl.dtype)
    Ho, Wo = Hx - Hz + 1, Wx - Wz + 1

    Cb = _pick_channel_block(C)
    n_chan = C // Cb

    # Padding-aware per-batch VMEM footprint of one (batch, channel) block.
    itemsize = jnp.dtype(x_cl.dtype).itemsize
    sub = 8 * max(1, 4 // itemsize)                 # sublane pad: 8 f32, 16 bf16
    c_pad = _pad_to(Cb, 128)
    in_b = (Hz * _pad_to(Wz, sub) + Hx * _pad_to(Wx, sub)) * c_pad * itemsize
    out_b = Ho * _pad_to(Wo, sub) * c_pad * itemsize
    scr_b = Wz * Hx * _pad_to(Wo, 8) * c_pad * 4    # f32 scratch

    cap = _vmem_capacity_bytes()
    budget = (cap * 3) // 4                         # ~48 MiB v7x, ~96 MiB v5e/v6e
    target_step_bytes = min(8 << 20, budget // 6)   # multi-MiB steps on 128 MiB parts

    per_batch = in_b + out_b + scr_b
    BB = max(1, min(B, target_step_bytes // max(1, per_batch)))
    if n_chan < 2 and B >= 2:
        BB = min(BB, B // 2)                        # keep >= 2 parallel grid steps
    while B % BB:
        BB -= 1

    def _vmem_need(bb):
        # in/out blocks are double-buffered by the pipeline; scratch is not.
        return 2 * bb * (in_b + out_b) + bb * scr_b + (2 << 20)

    while BB > 1 and _vmem_need(BB) > budget:
        BB -= 1
        while B % BB:
            BB -= 1
    n_batch = B // BB

    # Always pass a generation-aware scoped-VMEM limit (v5e's default is only
    # 16 MiB); 2x headroom over the estimate for relayout temporaries, capped
    # safely below physical VMEM.
    vmem_limit = int(min(budget, max(2 * _vmem_need(BB), 32 << 20)))

    cost = pl.CostEstimate(
        flops=2 * B * C * Ho * Wo * Hz * Wz,
        transcendentals=0,
        bytes_accessed=(z_cl.size + x_cl.size + B * Ho * Wo * C) * itemsize,
    )

    return pl.pallas_call(
        _xcorr_depthwise_kernel,
        out_shape=jax.ShapeDtypeStruct((B, Ho, Wo, C), x_cl.dtype),
        grid_spec=pltpu.PrefetchScalarGridSpec(
            num_scalar_prefetch=0,
            grid=(n_batch, n_chan),
            in_specs=[
                pl.BlockSpec((BB, Hz, Wz, Cb), lambda b, c: (b, 0, 0, c)),
                pl.BlockSpec((BB, Hx, Wx, Cb), lambda b, c: (b, 0, 0, c)),
            ],
            out_specs=pl.BlockSpec((BB, Ho, Wo, Cb), lambda b, c: (b, 0, 0, c)),
            scratch_shapes=[pltpu.VMEM((Wz * BB, Hx, Wo, Cb), jnp.float32)],
        ),
        compiler_params=pltpu.CompilerParams(
            dimension_semantics=("parallel", "parallel"),
            vmem_limit_bytes=vmem_limit,
        ),
        cost_estimate=cost,
    )(z_cl, x_cl)


def rpn_xcorr_depthwise(z_f, x_f):
    """NCHW-facing wrapper matching the PyTorch RPN call signature.

    z_f: (B, C, Hz, Wz), x_f: (B, C, Hx, Wx) -> (B, C, Hx-Hz+1, Wx-Wz+1).

    Perf note (per review): the transposes below are full HBM round-trips that
    can dominate this small kernel's wall clock; in a real model keep the
    backbone features NHWC end-to-end and call rpn_xcorr_depthwise_nhwc.
    """
    z_cl = jnp.transpose(z_f, (0, 2, 3, 1))   # (B, Hz, Wz, C)
    x_cl = jnp.transpose(x_f, (0, 2, 3, 1))   # (B, Hx, Wx, C)
    out_cl = rpn_xcorr_depthwise_nhwc(z_cl, x_cl)
    return jnp.transpose(out_cl, (0, 3, 1, 2))


# --------------------------------------------------------------------------- #
# Pure-JAX reference
# --------------------------------------------------------------------------- #
def _xcorr_depthwise_ref(z_f, x_f):
    """Reference via grouped convolution (lax conv == correlation)."""
    B, C, Hz, Wz = z_f.shape
    _, _, Hx, Wx = x_f.shape
    x = x_f.reshape(1, B * C, Hx, Wx)
    k = z_f.reshape(B * C, 1, Hz, Wz)
    out = lax.conv_general_dilated(
        x, k,
        window_strides=(1, 1),
        padding="VALID",
        dimension_numbers=("NCHW", "OIHW", "NCHW"),
        feature_group_count=B * C,
    )
    return out.reshape(B, C, Hx - Hz + 1, Wx - Wz + 1)


if __name__ == "__main__":
    key = jax.random.PRNGKey(0)
    k_z, k_x = jax.random.split(key)

    # Small shapes consistent with an RPN head: z_f = template feature,
    # x_f = search-region feature (spatially larger).
    B, C = 2, 4
    Hz = Wz = 4
    Hx = Wx = 16

    z_f = jax.random.normal(k_z, (B, C, Hz, Wz), dtype=jnp.float32)
    x_f = jax.random.normal(k_x, (B, C, Hx, Wx), dtype=jnp.float32)

    # f32 path
    out = jax.block_until_ready(rpn_xcorr_depthwise(z_f, x_f))
    ref = _xcorr_depthwise_ref(z_f, x_f)
    assert out.shape == (B, C, Hx - Hz + 1, Wx - Wz + 1), out.shape
    assert jnp.allclose(out, ref, atol=1e-4, rtol=1e-4), "f32 mismatch vs reference"

    # bf16 path: kernel pre-converts to f32 once and accumulates in f32, so it
    # should track the f32 reference to (bf16 input + bf16 output) rounding.
    z_bf = z_f.astype(jnp.bfloat16)
    x_bf = x_f.astype(jnp.bfloat16)
    out_bf = jax.block_until_ready(rpn_xcorr_depthwise(z_bf, x_bf))
    ref_bf = _xcorr_depthwise_ref(z_bf.astype(jnp.float32), x_bf.astype(jnp.float32))
    assert out_bf.shape == ref_bf.shape
    assert jnp.allclose(out_bf.astype(jnp.float32), ref_bf, atol=1e-1, rtol=5e-2), \
        "bf16 mismatch vs f32 reference"

    print("KERNEL_OK")
</pallas_src>

<mosaic_0001>
module attributes {stable_mosaic.version = 11 : i64} {
  func.func @_xcorr_depthwise_kernel(%arg0: i32, %arg1: i32, %arg2: memref<1x4x4x4xf32, #tpu.memory_space<vmem>>, %arg3: memref<1x16x16x4xf32, #tpu.memory_space<vmem>>, %arg4: memref<1x13x13x4xf32, #tpu.memory_space<vmem>>, %arg5: memref<4x16x13x4xf32, #tpu.memory_space<vmem>>) attributes {dimension_semantics = [#tpu.dimension_semantics<parallel>, #tpu.dimension_semantics<parallel>], iteration_bounds = array<i64: 2, 1>, scalar_prefetch = 0 : i64, scratch_operands = 1 : i64, tpu.core_type = #tpu.core_type<tc>, window_params = [{transform_indices = @transform_0, window_bounds = array<i64: 1, 4, 4, 4>}, {transform_indices = @transform_1, window_bounds = array<i64: 1, 16, 16, 4>}, {transform_indices = @transform_2, window_bounds = array<i64: 1, 13, 13, 4>}]} {
    %c0 = arith.constant 0 : index
    %c0_0 = arith.constant 0 : index
    %c0_1 = arith.constant 0 : index
    %c0_2 = arith.constant 0 : index
    %0 = vector.load %arg3[%c0, %c0_0, %c0_1, %c0_2] : memref<1x16x16x4xf32, #tpu.memory_space<vmem>>, vector<1x16x13x4xf32>
    %c0_3 = arith.constant 0 : index
    %c0_4 = arith.constant 0 : index
    %c0_5 = arith.constant 0 : index
    %c0_6 = arith.constant 0 : index
    %1 = vector.load %arg5[%c0_3, %c0_4, %c0_5, %c0_6] : memref<4x16x13x4xf32, #tpu.memory_space<vmem>>, vector<1x16x13x4xf32>
    tpu.vector_store %arg5[%c0_3, %c0_4, %c0_5, %c0_6], %0 {strides = array<i32>} : memref<4x16x13x4xf32, #tpu.memory_space<vmem>>, vector<1x16x13x4xf32>,
    %c0_7 = arith.constant 0 : index
    %c0_8 = arith.constant 0 : index
    %c1 = arith.constant 1 : index
    %c0_9 = arith.constant 0 : index
    %2 = vector.load %arg3[%c0_7, %c0_8, %c1, %c0_9] : memref<1x16x16x4xf32, #tpu.memory_space<vmem>>, vector<1x16x13x4xf32>
    %c1_10 = arith.constant 1 : index
    %c0_11 = arith.constant 0 : index
    %c0_12 = arith.constant 0 : index
    %c0_13 = arith.constant 0 : index
    %3 = vector.load %arg5[%c1_10, %c0_11, %c0_12, %c0_13] : memref<4x16x13x4xf32, #tpu.memory_space<vmem>>, vector<1x16x13x4xf32>
    tpu.vector_store %arg5[%c1_10, %c0_11, %c0_12, %c0_13], %2 {strides = array<i32>} : memref<4x16x13x4xf32, #tpu.memory_space<vmem>>, vector<1x16x13x4xf32>,
    %c0_14 = arith.constant 0 : index
    %c0_15 = arith.constant 0 : index
    %c2 = arith.constant 2 : index
    %c0_16 = arith.constant 0 : index
    %4 = vector.load %arg3[%c0_14, %c0_15, %c2, %c0_16] : memref<1x16x16x4xf32, #tpu.memory_space<vmem>>, vector<1x16x13x4xf32>
    %c2_17 = arith.constant 2 : index
    %c0_18 = arith.constant 0 : index
    %c0_19 = arith.constant 0 : index
    %c0_20 = arith.constant 0 : index
    %5 = vector.load %arg5[%c2_17, %c0_18, %c0_19, %c0_20] : memref<4x16x13x4xf32, #tpu.memory_space<vmem>>, vector<1x16x13x4xf32>
    tpu.vector_store %arg5[%c2_17, %c0_18, %c0_19, %c0_20], %4 {strides = array<i32>} : memref<4x16x13x4xf32, #tpu.memory_space<vmem>>, vector<1x16x13x4xf32>,
    %c0_21 = arith.constant 0 : index
    %c0_22 = arith.constant 0 : index
    %c3 = arith.constant 3 : index
    %c0_23 = arith.constant 0 : index
    %6 = vector.load %arg3[%c0_21, %c0_22, %c3, %c0_23] : memref<1x16x16x4xf32, #tpu.memory_space<vmem>>, vector<1x16x13x4xf32>
    %c3_24 = arith.constant 3 : index
    %c0_25 = arith.constant 0 : index
    %c0_26 = arith.constant 0 : index
    %c0_27 = arith.constant 0 : index
    %7 = vector.load %arg5[%c3_24, %c0_25, %c0_26, %c0_27] : memref<4x16x13x4xf32, #tpu.memory_space<vmem>>, vector<1x16x13x4xf32>
    tpu.vector_store %arg5[%c3_24, %c0_25, %c0_26, %c0_27], %6 {strides = array<i32>} : memref<4x16x13x4xf32, #tpu.memory_space<vmem>>, vector<1x16x13x4xf32>,
    %c0_28 = arith.constant 0 : index
    %c0_29 = arith.constant 0 : index
    %c0_30 = arith.constant 0 : index
    %c0_31 = arith.constant 0 : index
    %8 = vector.load %arg2[%c0_28, %c0_29, %c0_30, %c0_31] : memref<1x4x4x4xf32, #tpu.memory_space<vmem>>, vector<1x4x4x4xf32>
    %9 = vector.extract_strided_slice %8 {offsets = [0, 0, 0, 0], sizes = [1, 1, 1, 4], strides = [1, 1, 1, 1]} : vector<1x4x4x4xf32> to vector<1x1x1x4xf32>
    %10 = vector.extract_strided_slice %8 {offsets = [0, 0, 1, 0], sizes = [1, 1, 1, 4], strides = [1, 1, 1, 1]} : vector<1x4x4x4xf32> to vector<1x1x1x4xf32>
    %11 = vector.extract_strided_slice %8 {offsets = [0, 0, 2, 0], sizes = [1, 1, 1, 4], strides = [1, 1, 1, 1]} : vector<1x4x4x4xf32> to vector<1x1x1x4xf32>
    %12 = vector.extract_strided_slice %8 {offsets = [0, 0, 3, 0], sizes = [1, 1, 1, 4], strides = [1, 1, 1, 1]} : vector<1x4x4x4xf32> to vector<1x1x1x4xf32>
    %13 = vector.extract_strided_slice %8 {offsets = [0, 1, 0, 0], sizes = [1, 1, 1, 4], strides = [1, 1, 1, 1]} : vector<1x4x4x4xf32> to vector<1x1x1x4xf32>
    %14 = vector.extract_strided_slice %8 {offsets = [0, 1, 1, 0], sizes = [1, 1, 1, 4], strides = [1, 1, 1, 1]} : vector<1x4x4x4xf32> to vector<1x1x1x4xf32>
    %15 = vector.extract_strided_slice %8 {offsets = [0, 1, 2, 0], sizes = [1, 1, 1, 4], strides = [1, 1, 1, 1]} : vector<1x4x4x4xf32> to vector<1x1x1x4xf32>
    %16 = vector.extract_strided_slice %8 {offsets = [0, 1, 3, 0], sizes = [1, 1, 1, 4], strides = [1, 1, 1, 1]} : vector<1x4x4x4xf32> to vector<1x1x1x4xf32>
    %17 = vector.extract_strided_slice %8 {offsets = [0, 2, 0, 0], sizes = [1, 1, 1, 4], strides = [1, 1, 1, 1]} : vector<1x4x4x4xf32> to vector<1x1x1x4xf32>
    %18 = vector.extract_strided_slice %8 {offsets = [0, 2, 1, 0], sizes = [1, 1, 1, 4], strides = [1, 1, 1, 1]} : vector<1x4x4x4xf32> to vector<1x1x1x4xf32>
    %19 = vector.extract_strided_slice %8 {offsets = [0, 2, 2, 0], sizes = [1, 1, 1, 4], strides = [1, 1, 1, 1]} : vector<1x4x4x4xf32> to vector<1x1x1x4xf32>
    %20 = vector.extract_strided_slice %8 {offsets = [0, 2, 3, 0], sizes = [1, 1, 1, 4], strides = [1, 1, 1, 1]} : vector<1x4x4x4xf32> to vector<1x1x1x4xf32>
    %21 = vector.extract_strided_slice %8 {offsets = [0, 3, 0, 0], sizes = [1, 1, 1, 4], strides = [1, 1, 1, 1]} : vector<1x4x4x4xf32> to vector<1x1x1x4xf32>
    %22 = vector.extract_strided_slice %8 {offsets = [0, 3, 1, 0], sizes = [1, 1, 1, 4], strides = [1, 1, 1, 1]} : vector<1x4x4x4xf32> to vector<1x1x1x4xf32>
    %23 = vector.extract_strided_slice %8 {offsets = [0, 3, 2, 0], sizes = [1, 1, 1, 4], strides = [1, 1, 1, 1]} : vector<1x4x4x4xf32> to vector<1x1x1x4xf32>
    %24 = vector.extract_strided_slice %8 {offsets = [0, 3, 3, 0], sizes = [1, 1, 1, 4], strides = [1, 1, 1, 1]} : vector<1x4x4x4xf32> to vector<1x1x1x4xf32>
    %cst = arith.constant 0.000000e+00 : f32
    %25 = vector.broadcast %cst : f32 to vector<1x13x13x4xf32>
    %c0_32 = arith.constant 0 : index
    %c0_33 = arith.constant 0 : index
    %c0_34 = arith.constant 0 : index
    %c0_35 = arith.constant 0 : index
    %26 = vector.load %arg5[%c0_32, %c0_33, %c0_34, %c0_35] : memref<4x16x13x4xf32, #tpu.memory_space<vmem>>, vector<1x13x13x4xf32>
    %27 = vector.broadcast %9 : vector<1x1x1x4xf32> to vector<1x13x13x4xf32>
    %28 = arith.mulf %27, %26 : vector<1x13x13x4xf32>
    %29 = arith.addf %25, %28 : vector<1x13x13x4xf32>
    %c1_36 = arith.constant 1 : index
    %c0_37 = arith.constant 0 : index
    %c0_38 = arith.constant 0 : index
    %c0_39 = arith.constant 0 : index
    %30 = vector.load %arg5[%c1_36, %c0_37, %c0_38, %c0_39] : memref<4x16x13x4xf32, #tpu.memory_space<vmem>>, vector<1x13x13x4xf32>
    %31 = vector.broadcast %10 : vector<1x1x1x4xf32> to vector<1x13x13x4xf32>
    %32 = arith.mulf %31, %30 : vector<1x13x13x4xf32>
    %33 = arith.addf %29, %32 : vector<1x13x13x4xf32>
    %c2_40 = arith.constant 2 : index
    %c0_41 = arith.constant 0 : index
    %c0_42 = arith.constant 0 : index
    %c0_43 = arith.constant 0 : index
    %34 = vector.load %arg5[%c2_40, %c0_41, %c0_42, %c0_43] : memref<4x16x13x4xf32, #tpu.memory_space<vmem>>, vector<1x13x13x4xf32>
    %35 = vector.broadcast %11 : vector<1x1x1x4xf32> to vector<1x13x13x4xf32>
    %36 = arith.mulf %35, %34 : vector<1x13x13x4xf32>
    %37 = arith.addf %33, %36 : vector<1x13x13x4xf32>
    %c3_44 = arith.constant 3 : index
    %c0_45 = arith.constant 0 : index
    %c0_46 = arith.constant 0 : index
    %c0_47 = arith.constant 0 : index
    %38 = vector.load %arg5[%c3_44, %c0_45, %c0_46, %c0_47] : memref<4x16x13x4xf32, #tpu.memory_space<vmem>>, vector<1x13x13x4xf32>
    %39 = vector.broadcast %12 : vector<1x1x1x4xf32> to vector<1x13x13x4xf32>
    %40 = arith.mulf %39, %38 : vector<1x13x13x4xf32>
    %41 = arith.addf %37, %40 : vector<1x13x13x4xf32>
    %c0_48 = arith.constant 0 : index
    %c1_49 = arith.constant 1 : index
    %c0_50 = arith.constant 0 : index
    %c0_51 = arith.constant 0 : index
    %42 = vector.load %arg5[%c0_48, %c1_49, %c0_50, %c0_51] : memref<4x16x13x4xf32, #tpu.memory_space<vmem>>, vector<1x13x13x4xf32>
    %43 = vector.broadcast %13 : vector<1x1x1x4xf32> to vector<1x13x13x4xf32>
    %44 = arith.mulf %43, %42 : vector<1x13x13x4xf32>
    %45 = arith.addf %41, %44 : vector<1x13x13x4xf32>
    %c1_52 = arith.constant 1 : index
    %c1_53 = arith.constant 1 : index
    %c0_54 = arith.constant 0 : index
    %c0_55 = arith.constant 0 : index
    %46 = vector.load %arg5[%c1_52, %c1_53, %c0_54, %c0_55] : memref<4x16x13x4xf32, #tpu.memory_space<vmem>>, vector<1x13x13x4xf32>
    %47 = vector.broadcast %14 : vector<1x1x1x4xf32> to vector<1x13x13x4xf32>
    %48 = arith.mulf %47, %46 : vector<1x13x13x4xf32>
    %49 = arith.addf %45, %48 : vector<1x13x13x4xf32>
    %c2_56 = arith.constant 2 : index
    %c1_57 = arith.constant 1 : index
    %c0_58 = arith.constant 0 : index
    %c0_59 = arith.constant 0 : index
    %50 = vector.load %arg5[%c2_56, %c1_57, %c0_58, %c0_59] : memref<4x16x13x4xf32, #tpu.memory_space<vmem>>, vector<1x13x13x4xf32>
    %51 = vector.broadcast %15 : vector<1x1x1x4xf32> to vector<1x13x13x4xf32>
    %52 = arith.mulf %51, %50 : vector<1x13x13x4xf32>
    %53 = arith.addf %49, %52 : vector<1x13x13x4xf32>
    %c3_60 = arith.constant 3 : index
    %c1_61 = arith.constant 1 : index
    %c0_62 = arith.constant 0 : index
    %c0_63 = arith.constant 0 : index
    %54 = vector.load %arg5[%c3_60, %c1_61, %c0_62, %c0_63] : memref<4x16x13x4xf32, #tpu.memory_space<vmem>>, vector<1x13x13x4xf32>
    %55 = vector.broadcast %16 : vector<1x1x1x4xf32> to vector<1x13x13x4xf32>
    %56 = arith.mulf %55, %54 : vector<1x13x13x4xf32>
    %57 = arith.addf %53, %56 : vector<1x13x13x4xf32>
    %c0_64 = arith.constant 0 : index
    %c2_65 = arith.constant 2 : index
    %c0_66 = arith.constant 0 : index
    %c0_67 = arith.constant 0 : index
    %58 = vector.load %arg5[%c0_64, %c2_65, %c0_66, %c0_67] : memref<4x16x13x4xf32, #tpu.memory_space<vmem>>, vector<1x13x13x4xf32>
    %59 = vector.broadcast %17 : vector<1x1x1x4xf32> to vector<1x13x13x4xf32>
    %60 = arith.mulf %59, %58 : vector<1x13x13x4xf32>
    %61 = arith.addf %57, %60 : vector<1x13x13x4xf32>
    %c1_68 = arith.constant 1 : index
    %c2_69 = arith.constant 2 : index
    %c0_70 = arith.constant 0 : index
    %c0_71 = arith.constant 0 : index
    %62 = vector.load %arg5[%c1_68, %c2_69, %c0_70, %c0_71] : memref<4x16x13x4xf32, #tpu.memory_space<vmem>>, vector<1x13x13x4xf32>
    %63 = vector.broadcast %18 : vector<1x1x1x4xf32> to vector<1x13x13x4xf32>
    %64 = arith.mulf %63, %62 : vector<1x13x13x4xf32>
    %65 = arith.addf %61, %64 : vector<1x13x13x4xf32>
    %c2_72 = arith.constant 2 : index
    %c2_73 = arith.constant 2 : index
    %c0_74 = arith.constant 0 : index
    %c0_75 = arith.constant 0 : index
    %66 = vector.load %arg5[%c2_72, %c2_73, %c0_74, %c0_75] : memref<4x16x13x4xf32, #tpu.memory_space<vmem>>, vector<1x13x13x4xf32>
    %67 = vector.broadcast %19 : vector<1x1x1x4xf32> to vector<1x13x13x4xf32>
    %68 = arith.mulf %67, %66 : vector<1x13x13x4xf32>
    %69 = arith.addf %65, %68 : vector<1x13x13x4xf32>
    %c3_76 = arith.constant 3 : index
    %c2_77 = arith.constant 2 : index
    %c0_78 = arith.constant 0 : index
    %c0_79 = arith.constant 0 : index
    %70 = vector.load %arg5[%c3_76, %c2_77, %c0_78, %c0_79] : memref<4x16x13x4xf32, #tpu.memory_space<vmem>>, vector<1x13x13x4xf32>
    %71 = vector.broadcast %20 : vector<1x1x1x4xf32> to vector<1x13x13x4xf32>
    %72 = arith.mulf %71, %70 : vector<1x13x13x4xf32>
    %73 = arith.addf %69, %72 : vector<1x13x13x4xf32>
    %c0_80 = arith.constant 0 : index
    %c3_81 = arith.constant 3 : index
    %c0_82 = arith.constant 0 : index
    %c0_83 = arith.constant 0 : index
    %74 = vector.load %arg5[%c0_80, %c3_81, %c0_82, %c0_83] : memref<4x16x13x4xf32, #tpu.memory_space<vmem>>, vector<1x13x13x4xf32>
    %75 = vector.broadcast %21 : vector<1x1x1x4xf32> to vector<1x13x13x4xf32>
    %76 = arith.mulf %75, %74 : vector<1x13x13x4xf32>
    %77 = arith.addf %73, %76 : vector<1x13x13x4xf32>
    %c1_84 = arith.constant 1 : index
    %c3_85 = arith.constant 3 : index
    %c0_86 = arith.constant 0 : index
    %c0_87 = arith.constant 0 : index
    %78 = vector.load %arg5[%c1_84, %c3_85, %c0_86, %c0_87] : memref<4x16x13x4xf32, #tpu.memory_space<vmem>>, vector<1x13x13x4xf32>
    %79 = vector.broadcast %22 : vector<1x1x1x4xf32> to vector<1x13x13x4xf32>
    %80 = arith.mulf %79, %78 : vector<1x13x13x4xf32>
    %81 = arith.addf %77, %80 : vector<1x13x13x4xf32>
    %c2_88 = arith.constant 2 : index
    %c3_89 = arith.constant 3 : index
    %c0_90 = arith.constant 0 : index
    %c0_91 = arith.constant 0 : index
    %82 = vector.load %arg5[%c2_88, %c3_89, %c0_90, %c0_91] : memref<4x16x13x4xf32, #tpu.memory_space<vmem>>, vector<1x13x13x4xf32>
    %83 = vector.broadcast %23 : vector<1x1x1x4xf32> to vector<1x13x13x4xf32>
    %84 = arith.mulf %83, %82 : vector<1x13x13x4xf32>
    %85 = arith.addf %81, %84 : vector<1x13x13x4xf32>
    %c3_92 = arith.constant 3 : index
    %c3_93 = arith.constant 3 : index
    %c0_94 = arith.constant 0 : index
    %c0_95 = arith.constant 0 : index
    %86 = vector.load %arg5[%c3_92, %c3_93, %c0_94, %c0_95] : memref<4x16x13x4xf32, #tpu.memory_space<vmem>>, vector<1x13x13x4xf32>
    %87 = vector.broadcast %24 : vector<1x1x1x4xf32> to vector<1x13x13x4xf32>
    %88 = arith.mulf %87, %86 : vector<1x13x13x4xf32>
    %89 = arith.addf %85, %88 : vector<1x13x13x4xf32>
    %c0_96 = arith.constant 0 : index
    %c0_97 = arith.constant 0 : index
    %c0_98 = arith.constant 0 : index
    %c0_99 = arith.constant 0 : index
    %90 = vector.load %arg4[%c0_96, %c0_97, %c0_98, %c0_99] : memref<1x13x13x4xf32, #tpu.memory_space<vmem>>, vector<1x13x13x4xf32>
    tpu.vector_store %arg4[%c0_96, %c0_97, %c0_98, %c0_99], %89 {strides = array<i32>} : memref<1x13x13x4xf32, #tpu.memory_space<vmem>>, vector<1x13x13x4xf32>,
    return
  }
  func.func @transform_0(%arg0: i32, %arg1: i32) -> (i32, i32, i32, i32) {
    %c0_i32 = arith.constant 0 : i32
    %c0_i32_0 = arith.constant 0 : i32
    %c0_i32_1 = arith.constant 0 : i32
    return %arg0, %c0_i32, %c0_i32_0, %arg1 : i32, i32, i32, i32
  }
  func.func @transform_1(%arg0: i32, %arg1: i32) -> (i32, i32, i32, i32) {
    %c0_i32 = arith.constant 0 : i32
    %c0_i32_0 = arith.constant 0 : i32
    %c0_i32_1 = arith.constant 0 : i32
    return %arg0, %c0_i32, %c0_i32_0, %arg1 : i32, i32, i32, i32
  }
  func.func @transform_2(%arg0: i32, %arg1: i32) -> (i32, i32, i32, i32) {
    %c0_i32 = arith.constant 0 : i32
    %c0_i32_0 = arith.constant 0 : i32
    %c0_i32_1 = arith.constant 0 : i32
    return %arg0, %c0_i32, %c0_i32_0, %arg1 : i32, i32, i32, i32
  }
}

</mosaic_0001>

<bundles_post_ra>
// kernel: tpu_custom_call.1
= control target key start
LH: loop header
LB: loop body
LE: loop exit
PB: predicated region body
PF: predicated region fallthrough
CT: control target
= control target key end

     0   :  { %s1952_s9 = smov 0   ;;  %s1954_s10 = smov 0   ;;  %s3234_s0 = inlined_call_operand.vmem [shape: f32[2,4,4,4], index: 0, kind: input, shape index: {}]   ;;  %s3235_s1 = inlined_call_operand.vmem [shape: f32[2,16,16,4], index: 1, kind: input, shape index: {}]   ;;  %s3236_s2 = inlined_call_operand.vmem [shape: f32[2,13,13,4], index: 2, kind: output, shape index: {}]  }
   0x1   :  { %s1956_s11 = smov 0  }
   0x2 LB: > { %s24_s12 = sadd.s32 1, %s1931_s10  ;;  %p1878_p0 = scmp.ge.s32.totalorder %s1935_s11, 1  ;;  %s1935_s11 = sphi %s1956_s11, %s12_s11   ;;  %s1931_s10 = sphi %s1954_s10, %s3308_s10   ;;  %s1927_s9 = sphi %s1952_s9, %s3307_s9  }
   0x3   : > { %p26_p1 = scmp.ge.s32.totalorder %s24_s12, 2  ;;  %p146_p2 = scmp.lt.s32.totalorder %s1935_s11, 3 }
   0x5   : > { %s3310_s12 = smov (%p26_p1, %s24_s12), 0  ;;  %p147_p3 = pnand %p1878_p0, %p146_p2 }
   0x7   : > { %150 = sbr.rel (%p147_p3) target bundleno = 337 (0x151), region = 28 }
   0xc   : > { %p182_p4 = scmp.lt.s32.totalorder %s1927_s9, 1  ;;  %vm238_vm0 = vcmask 31744   ;;  %vm240_vm1 = vcmask 28672  }
   0xe   : > { %s3312_s9 = smov (!%p182_p4, %s1927_s9), 1 }
   0xf   : > { %s1887_s13 = sshll.u32 %s3312_s9, 8  ;;  %s1886_s17 = sshll.u32 %s3312_s9, 4 }
  0x10   : > { %s1976_s16 = scalar_lea.vmem %s3235_s1, %s1887_s13  ;;  %s2095_s20 = scalar_lea.vmem %s3234_s0, %s1886_s17 }
  0x11   : > { %v206_v0 = vld [vmem:[%s1976_s16] sm:$0xff]  ;;  %v207_v1 = vld [vmem:[%s1976_s16 + $0x8] sm:$0x1f]  ;;  %v208_v2 = vld [vmem:[%s1976_s16 + $0x10] sm:$0xff]  ;;  %s1888_s21 = smul.u32 208, %s3312_s9 }
  0x12   : > { %239 = vst.msk [vmem:[#allocation2] sm:$0xff] %vm238_vm0, %v206_v0  ;;  %v209_v3 = vld [vmem:[%s1976_s16 + $0x18] sm:$0x1f]  ;;  %v210_v4 = vld [vmem:[%s1976_s16 + $0x20] sm:$0xff]  ;;  %v211_v5 = vld [vmem:[%s1976_s16 + $0x28] sm:$0x1f] }
  0x13   : > { %241 = vst.msk [vmem:[#allocation2 + $0x8] sm:$0x1f] %vm240_vm1, %v207_v1  ;;  %v212_v6 = vld [vmem:[%s1976_s16 + $0x30] sm:$0xff]  ;;  %v213_v7 = vld [vmem:[%s1976_s16 + $0x38] sm:$0x1f]  ;;  %v214_v8 = vld [vmem:[%s1976_s16 + $0x40] sm:$0xff]  ;;  %s2673_s24 = scalar_lea.vmem %s3236_s2, %s1888_s21 }
  0x14   : > { %242 = vst.msk [vmem:[#allocation2 + $0x10] sm:$0xff] %vm238_vm0, %v208_v2  ;;  %v215_v9 = vld [vmem:[%s1976_s16 + $0x48] sm:$0x1f]  ;;  %v216_v10 = vld [vmem:[%s1976_s16 + $0x50] sm:$0xff]  ;;  %v217_v11 = vld [vmem:[%s1976_s16 + $0x58] sm:$0x1f] }
  0x15   : > { %243 = vst.msk [vmem:[#allocation2 + $0x18] sm:$0x1f] %vm240_vm1, %v209_v3  ;;  %v218_v12 = vld [vmem:[%s1976_s16 + $0x60] sm:$0xff]  ;;  %v219_v13 = vld [vmem:[%s1976_s16 + $0x68] sm:$0x1f]  ;;  %v220_v14 = vld [vmem:[%s1976_s16 + $0x70] sm:$0xff] }
  0x16   : > { %244 = vst.msk [vmem:[#allocation2 + $0x20] sm:$0xff] %vm238_vm0, %v210_v4  ;;  %v221_v15 = vld [vmem:[%s1976_s16 + $0x78] sm:$0x1f]  ;;  %v222_v16 = vld [vmem:[%s1976_s16 + $0x80] sm:$0xff]  ;;  %v223_v17 = vld [vmem:[%s1976_s16 + $0x88] sm:$0x1f] }
  0x17   : > { %245 = vst.msk [vmem:[#allocation2 + $0x28] sm:$0x1f] %vm240_vm1, %v211_v5  ;;  %v224_v18 = vld [vmem:[%s1976_s16 + $0x90] sm:$0xff]  ;;  %v225_v19 = vld [vmem:[%s1976_s16 + $0x98] sm:$0x1f]  ;;  %v226_v20 = vld [vmem:[%s1976_s16 + $0xa0] sm:$0xff] }
  0x18   : > { %246 = vst.msk [vmem:[#allocation2 + $0x30] sm:$0xff] %vm238_vm0, %v212_v6  ;;  %v227_v21 = vld [vmem:[%s1976_s16 + $0xa8] sm:$0x1f]  ;;  %v228_v22 = vld [vmem:[%s1976_s16 + $0xb0] sm:$0xff]  ;;  %v229_v23 = vld [vmem:[%s1976_s16 + $0xb8] sm:$0x1f] }
  0x19   : > { %247 = vst.msk [vmem:[#allocation2 + $0x38] sm:$0x1f] %vm240_vm1, %v213_v7  ;;  %v230_v24 = vld [vmem:[%s1976_s16 + $0xc0] sm:$0xff]  ;;  %v231_v25 = vld [vmem:[%s1976_s16 + $0xc8] sm:$0x1f]  ;;  %v274_v28 = vld [vmem:[%s1976_s16 + $0x11] sm:$0xff] }
  0x1a   : > { %248 = vst.msk [vmem:[#allocation2 + $0x40] sm:$0xff] %vm238_vm0, %v214_v8  ;;  %v272_v26 = vld [vmem:[%s1976_s16 + $0x1] sm:$0xff]  ;;  %v273_v27 = vld [vmem:[%s1976_s16 + $0x9] sm:$0x1f]  ;;  %v275_v29 = vld [vmem:[%s1976_s16 + $0x19] sm:$0x1f] }
  0x1b   : > { %249 = vst.msk [vmem:[#allocation2 + $0x48] sm:$0x1f] %vm240_vm1, %v215_v9  ;;  %v276_v30 = vld [vmem:[%s1976_s16 + $0x21] sm:$0xff]  ;;  %v277_v31 = vld [vmem:[%s1976_s16 + $0x29] sm:$0x1f]  ;;  %v278_v32 = vld [vmem:[%s1976_s16 + $0x31] sm:$0xff] }
  0x1c   : > { %250 = vst.msk [vmem:[#allocation2 + $0x50] sm:$0xff] %vm238_vm0, %v216_v10  ;;  %v279_v33 = vld [vmem:[%s1976_s16 + $0x39] sm:$0x1f]  ;;  %v280_v34 = vld [vmem:[%s1976_s16 + $0x41] sm:$0xff]  ;;  %v281_v35 = vld [vmem:[%s1976_s16 + $0x49] sm:$0x1f] }
  0x1d   : > { %251 = vst.msk [vmem:[#allocation2 + $0x58] sm:$0x1f] %vm240_vm1, %v217_v11  ;;  %v282_v36 = vld [vmem:[%s1976_s16 + $0x51] sm:$0xff]  ;;  %v283_v37 = vld [vmem:[%s1976_s16 + $0x59] sm:$0x1f]  ;;  %v284_v38 = vld [vmem:[%s1976_s16 + $0x61] sm:$0xff] }
  0x1e   : > { %252 = vst.msk [vmem:[#allocation2 + $0x60] sm:$0xff] %vm238_vm0, %v218_v12  ;;  %v285_v39 = vld [vmem:[%s1976_s16 + $0x69] sm:$0x1f]  ;;  %v286_v40 = vld [vmem:[%s1976_s16 + $0x71] sm:$0xff]  ;;  %v287_v41 = vld [vmem:[%s1976_s16 + $0x79] sm:$0x1f] }
  0x1f   : > { %253 = vst.msk [vmem:[#allocation2 + $0x68] sm:$0x1f] %vm240_vm1, %v219_v13  ;;  %v288_v42 = vld [vmem:[%s1976_s16 + $0x81] sm:$0xff]  ;;  %v289_v43 = vld [vmem:[%s1976_s16 + $0x89] sm:$0x1f]  ;;  %v290_v44 = vld [vmem:[%s1976_s16 + $0x91] sm:$0xff] }
  0x20   : > { %254 = vst.msk [vmem:[#allocation2 + $0x70] sm:$0xff] %vm238_vm0, %v220_v14  ;;  %v291_v45 = vld [vmem:[%s1976_s16 + $0x99] sm:$0x1f]  ;;  %v292_v46 = vld [vmem:[%s1976_s16 + $0xa1] sm:$0xff]  ;;  %v293_v47 = vld [vmem:[%s1976_s16 + $0xa9] sm:$0x1f] }
  0x21   : > { %255 = vst.msk [vmem:[#allocation2 + $0x78] sm:$0x1f] %vm240_vm1, %v221_v15  ;;  %v294_v48 = vld [vmem:[%s1976_s16 + $0xb1] sm:$0xff]  ;;  %v295_v49 = vld [vmem:[%s1976_s16 + $0xb9] sm:$0x1f]  ;;  %v296_v50 = vld [vmem:[%s1976_s16 + $0xc1] sm:$0xff] }
  0x22   : > { %256 = vst.msk [vmem:[#allocation2 + $0x80] sm:$0xff] %vm238_vm0, %v222_v16  ;;  %v297_v51 = vld [vmem:[%s1976_s16 + $0xc9] sm:$0x1f]  ;;  %v339_v54 = vld [vmem:[%s1976_s16 + $0x12] sm:$0xff]  ;;  %v340_v55 = vld [vmem:[%s1976_s16 + $0x1a] sm:$0x1f] }
  0x23   : > { %257 = vst.msk [vmem:[#allocation2 + $0x88] sm:$0x1f] %vm240_vm1, %v223_v17  ;;  %v337_v52 = vld [vmem:[%s1976_s16 + $0x2] sm:$0xff]  ;;  %v338_v53 = vld [vmem:[%s1976_s16 + $0xa] sm:$0x1f]  ;;  %v343_v58 = vld [vmem:[%s1976_s16 + $0x32] sm:$0xff] }
  0x24   : > { %258 = vst.msk [vmem:[#allocation2 + $0x90] sm:$0xff] %vm238_vm0, %v224_v18  ;;  %v341_v56 = vld [vmem:[%s1976_s16 + $0x22] sm:$0xff]  ;;  %v342_v57 = vld [vmem:[%s1976_s16 + $0x2a] sm:$0x1f]  ;;  %v344_v59 = vld [vmem:[%s1976_s16 + $0x3a] sm:$0x1f] }
  0x25   : > { %259 = vst.msk [vmem:[#allocation2 + $0x98] sm:$0x1f] %vm240_vm1, %v225_v19  ;;  %v345_v60 = vld [vmem:[%s1976_s16 + $0x42] sm:$0xff]  ;;  %v346_v62 = vld [vmem:[%s1976_s16 + $0x4a] sm:$0x1f]  ;;  %v347_v63 = vld [vmem:[%s1976_s16 + $0x52] sm:$0xff] }
  0x26   : > { %260 = vst.msk [vmem:[#allocation2 + $0xa0] sm:$0xff] %vm238_vm0, %v226_v20  ;;  %v2104_v61 = vld [vmem:[%s2095_s20] sm:$0xf]  ;;  %v348_v0 = vld [vmem:[%s1976_s16 + $0x5a] sm:$0x1f]  ;;  %v2117_v5 = vld [vmem:[#allocation2 + $0x10] sm:$0xff] }
  0x27   : > { %261 = vst.msk [vmem:[#allocation2 + $0xa8] sm:$0x1f] %vm240_vm1, %v227_v21  ;;  %v2113_v1 = vperm.slane %v2104_v61, 0  ;;  %v349_v2 = vld [vmem:[%s1976_s16 + $0x62] sm:$0xff]  ;;  %v474_v6 = vld [vmem:[#allocation2 + $0x18] sm:$0x1f] }
  0x28   : > { %262 = vst.msk [vmem:[#allocation2 + $0xb0] sm:$0xff] %vm238_vm0, %v228_v22  ;;  %v471_v3 = vld [vmem:[#allocation2] sm:$0xff]  ;;  %v472_v4 = vld [vmem:[#allocation2 + $0x8] sm:$0x1f]  ;;  %v2120_v7 = vperm.slane %v2104_v61, 1  ;;  %v2126_v11 = vld [vmem:[#allocation2 + $0x30] sm:$0xff] }
  0x29   : > { %263 = vst.msk [vmem:[#allocation2 + $0xb8] sm:$0x1f] %vm240_vm1, %v229_v23  ;;  %v350_v8 = vld [vmem:[%s1976_s16 + $0x6a] sm:$0x1f]  ;;  %v2124_v9 = vld [vmem:[#allocation2 + $0x20] sm:$0xff]  ;;  %v351_v13 = vld [vmem:[%s1976_s16 + $0x72] sm:$0xff] }
  0x2a   : > { %264 = vst.msk [vmem:[#allocation2 + $0xc0] sm:$0xff] %vm238_vm0, %v230_v24  ;;  %v476_v10 = vld [vmem:[#allocation2 + $0x28] sm:$0x1f]  ;;  %v478_v12 = vld [vmem:[#allocation2 + $0x38] sm:$0x1f]  ;;  %v2130_v14 = vld [vmem:[#allocation2 + $0x40] sm:$0xff] }
  0x2b   : > { %265 = vst.msk [vmem:[#allocation2 + $0xc8] sm:$0x1f] %vm240_vm1, %v231_v25  ;;  %v480_v15 = vld [vmem:[#allocation2 + $0x48] sm:$0x1f]  ;;  %v481_v16 = vld [vmem:[#allocation2 + $0x50] sm:$0xff]  ;;  %v483_v19 = vld [vmem:[#allocation2 + $0x60] sm:$0xff] }
  0x2c   : > { %305 = vst.msk [vmem:[#allocation2 + $0x100] sm:$0xff] %vm238_vm0, %v272_v26  ;;  %v482_v17 = vld [vmem:[#allocation2 + $0x58] sm:$0x1f]  ;;  %v484_v20 = vld [vmem:[#allocation2 + $0x68] sm:$0x1f]  ;;  %v485_v21 = vld [vmem:[#allocation2 + $0x70] sm:$0xff] }
  0x2d   : > { %306 = vst.msk [vmem:[#allocation2 + $0x108] sm:$0x1f] %vm240_vm1, %v273_v27  ;;  %v352_v18 = vld [vmem:[%s1976_s16 + $0x7a] sm:$0x1f]  ;;  %v353_v23 = vld [vmem:[%s1976_s16 + $0x82] sm:$0xff]  ;;  %v489_v26 = vld [vmem:[#allocation2 + $0x90] sm:$0xff] }
  0x2e   : > { %307 = vst.msk [vmem:[#allocation2 + $0x110] sm:$0xff] %vm238_vm0, %v274_v28  ;;  %v486_v22 = vld [vmem:[#allocation2 + $0x78] sm:$0x1f]  ;;  %v487_v24 = vld [vmem:[#allocation2 + $0x80] sm:$0xff]  ;;  %v488_v25 = vld [vmem:[#allocation2 + $0x88] sm:$0x1f] }
  0x2f   : > { %308 = vst.msk [vmem:[#allocation2 + $0x118] sm:$0x1f] %vm240_vm1, %v275_v29  ;;  %v490_v27 = vld [vmem:[#allocation2 + $0x98] sm:$0x1f]  ;;  %v354_v28 = vld [vmem:[%s1976_s16 + $0x8a] sm:$0x1f]  ;;  %v2139_v29 = vmul.f32 %v2113_v1, %v471_v3 }
  0x30   : > { %309 = vst.msk [vmem:[#allocation2 + $0x120] sm:$0xff] %vm238_vm0, %v276_v30  ;;  %v2142_v30 = vmul.f32 %v2113_v1, %v472_v4  ;;  %v360_v3 = vld [vmem:[%s1976_s16 + $0xba] sm:$0x1f]  ;;  %v2209_v4 = vmul.f32 %v2113_v1, %v487_v24 }
  0x31   : > { %310 = vst.msk [vmem:[#allocation2 + $0x128] sm:$0x1f] %vm240_vm1, %v277_v31  ;;  %v2146_v31 = vmul.f32 %v2113_v1, %v2117_v5 }
  0x32   : > { %311 = vst.msk [vmem:[#allocation2 + $0x130] sm:$0xff] %vm238_vm0, %v278_v32  ;;  %v2149_v32 = vmul.f32 %v2113_v1, %v474_v6  ;;  %v2212_v6 = vmul.f32 %v2113_v1, %v488_v25 }
  0x33   : > { %312 = vst.msk [vmem:[#allocation2 + $0x138] sm:$0x1f] %vm240_vm1, %v279_v33  ;;  %v491_v33 = vld [vmem:[#allocation2 + $0xa0] sm:$0xff] }
  0x34   : > { %313 = vst.msk [vmem:[#allocation2 + $0x140] sm:$0xff] %vm238_vm0, %v280_v34  ;;  %v492_v34 = vld [vmem:[#allocation2 + $0xa8] sm:$0x1f] }
  0x35   : > { %314 = vst.msk [vmem:[#allocation2 + $0x148] sm:$0x1f] %vm240_vm1, %v281_v35  ;;  %v493_v35 = vld [vmem:[#allocation2 + $0xb0] sm:$0xff] }
  0x36   : > { %315 = vst.msk [vmem:[#allocation2 + $0x150] sm:$0xff] %vm238_vm0, %v282_v36  ;;  %v494_v36 = vld [vmem:[#allocation2 + $0xb8] sm:$0x1f] }
  0x37   : > { %316 = vst.msk [vmem:[#allocation2 + $0x158] sm:$0x1f] %vm240_vm1, %v283_v37  ;;  %v355_v37 = vld [vmem:[%s1976_s16 + $0x92] sm:$0xff] }
  0x38   : > { %317 = vst.msk [vmem:[#allocation2 + $0x160] sm:$0xff] %vm238_vm0, %v284_v38  ;;  %v2155_v38 = vmul.f32 %v2113_v1, %v2124_v9 }
  0x39   : > { %318 = vst.msk [vmem:[#allocation2 + $0x168] sm:$0x1f] %vm240_vm1, %v285_v39  ;;  %v2158_v39 = vmul.f32 %v2113_v1, %v476_v10  ;;  %v2218_v10 = vmul.f32 %v2113_v1, %v490_v27 }
  0x3a   : > { %319 = vst.msk [vmem:[#allocation2 + $0x170] sm:$0xff] %vm238_vm0, %v286_v40  ;;  %v2162_v40 = vmul.f32 %v2113_v1, %v2126_v11 }
  0x3b   : > { %320 = vst.msk [vmem:[#allocation2 + $0x178] sm:$0x1f] %vm240_vm1, %v287_v41  ;;  %v2165_v41 = vmul.f32 %v2113_v1, %v478_v12 }
  0x3c   : > { %321 = vst.msk [vmem:[#allocation2 + $0x180] sm:$0xff] %vm238_vm0, %v288_v42  ;;  %v495_v42 = vld [vmem:[#allocation2 + $0xc0] sm:$0xff]  ;;  %v559_v12 = vld [vmem:[#allocation2 + $0x148] sm:$0x1f] }
  0x3d   : > { %322 = vst.msk [vmem:[#allocation2 + $0x188] sm:$0x1f] %vm240_vm1, %v289_v43  ;;  %v496_v43 = vld [vmem:[#allocation2 + $0xc8] sm:$0x1f]  ;;  %v2239_v24 = vmul.f32 %v2113_v1, %v495_v42 }
  0x3e   : > { %323 = vst.msk [vmem:[#allocation2 + $0x190] sm:$0xff] %vm238_vm0, %v290_v44  ;;  %v550_v44 = vld [vmem:[#allocation2 + $0x100] sm:$0xff]  ;;  %v2242_v25 = vmul.f32 %v2113_v1, %v496_v43 }
  0x3f   : > { %324 = vst.msk [vmem:[#allocation2 + $0x198] sm:$0x1f] %vm240_vm1, %v291_v45  ;;  %v551_v45 = vld [vmem:[#allocation2 + $0x108] sm:$0x1f] }
  0x40   : > { %325 = vst.msk [vmem:[#allocation2 + $0x1a0] sm:$0xff] %vm238_vm0, %v292_v46  ;;  %v356_v46 = vld [vmem:[%s1976_s16 + $0x9a] sm:$0x1f]  ;;  %v578_v27 = vmul.f32 %v2120_v7, %v551_v45 }
  0x41   : > { %326 = vst.msk [vmem:[#allocation2 + $0x1a8] sm:$0x1f] %vm240_vm1, %v293_v47  ;;  %v2171_v47 = vmul.f32 %v2113_v1, %v2130_v14 }
  0x42   : > { %327 = vst.msk [vmem:[#allocation2 + $0x1b0] sm:$0xff] %vm238_vm0, %v294_v48  ;;  %v2174_v48 = vmul.f32 %v2113_v1, %v480_v15  ;;  %v361_v15 = vld [vmem:[%s1976_s16 + $0xc2] sm:$0xff] }
  0x43   : > { %328 = vst.msk [vmem:[#allocation2 + $0x1b8] sm:$0x1f] %vm240_vm1, %v295_v49  ;;  %v2177_v49 = vmul.f32 %v2113_v1, %v481_v16  ;;  %v2225_v16 = vmul.f32 %v2113_v1, %v491_v33  ;;  %v565_v33 = vld [vmem:[#allocation2 + $0x178] sm:$0x1f] }
  0x44   : > { %329 = vst.msk [vmem:[#allocation2 + $0x1c0] sm:$0xff] %vm238_vm0, %v296_v50  ;;  %v2180_v50 = vmul.f32 %v2113_v1, %v482_v17  ;;  %v2228_v17 = vmul.f32 %v2113_v1, %v492_v34  ;;  %v566_v34 = vld [vmem:[#allocation2 + $0x180] sm:$0xff]  ;;  %v567_v43 = vld [vmem:[#allocation2 + $0x188] sm:$0x1f] }
  0x45   : > { %330 = vst.msk [vmem:[#allocation2 + $0x1c8] sm:$0x1f] %vm240_vm1, %v297_v51  ;;  %v2182_v51 = vld [vmem:[#allocation2 + $0x110] sm:$0xff] }
  0x46   : > { %370 = vst.msk [vmem:[#allocation2 + $0x200] sm:$0xff] %vm238_vm0, %v337_v52  ;;  %v553_v52 = vld [vmem:[#allocation2 + $0x118] sm:$0x1f] }
  0x47   : > { %371 = vst.msk [vmem:[#allocation2 + $0x208] sm:$0x1f] %vm240_vm1, %v338_v53  ;;  %v2184_v53 = vld [vmem:[#allocation2 + $0x120] sm:$0xff]  ;;  %v569_v45 = vld [vmem:[#allocation2 + $0x198] sm:$0x1f] }
  0x48   : > { %372 = vst.msk [vmem:[#allocation2 + $0x210] sm:$0xff] %vm238_vm0, %v339_v54  ;;  %v555_v54 = vld [vmem:[#allocation2 + $0x128] sm:$0x1f] }
  0x49   : > { %373 = vst.msk [vmem:[#allocation2 + $0x218] sm:$0x1f] %vm240_vm1, %v340_v55  ;;  %v357_v55 = vld [vmem:[%s1976_s16 + $0xa2] sm:$0xff]  ;;  %v2258_v42 = vmul.f32 %v2120_v7, %v555_v54  ;;  %v2274_v54 = vmul.f32 %v2120_v7, %v559_v12 }
  0x4a   : > { %374 = vst.msk [vmem:[#allocation2 + $0x220] sm:$0xff] %vm238_vm0, %v341_v56  ;;  %v358_v56 = vld [vmem:[%s1976_s16 + $0xaa] sm:$0x1f]  ;;  %v573_v12 = vld [vmem:[#allocation2 + $0x1b8] sm:$0x1f] }
  0x4b   : > { %375 = vst.msk [vmem:[#allocation2 + $0x228] sm:$0x1f] %vm240_vm1, %v342_v57  ;;  %v2190_v57 = vmul.f32 %v2113_v1, %v483_v19  ;;  %v2234_v19 = vmul.f32 %v2113_v1, %v494_v36  ;;  %v579_v36 = vmul.f32 %v2120_v7, %v2182_v51 }
  0x4c   : > { %376 = vst.msk [vmem:[#allocation2 + $0x230] sm:$0xff] %vm238_vm0, %v343_v58  ;;  %v2193_v58 = vmul.f32 %v2113_v1, %v484_v20  ;;  %v561_v20 = vld [vmem:[#allocation2 + $0x158] sm:$0x1f] }
  0x4d   : > { %377 = vst.msk [vmem:[#allocation2 + $0x238] sm:$0x1f] %vm240_vm1, %v344_v59  ;;  %v2196_v59 = vmul.f32 %v2113_v1, %v485_v21  ;;  %v562_v21 = vld [vmem:[#allocation2 + $0x160] sm:$0xff] }
  0x4e   : > { %378 = vst.msk [vmem:[#allocation2 + $0x240] sm:$0xff] %vm238_vm0, %v345_v60  ;;  %v2199_v60 = vmul.f32 %v2113_v1, %v486_v22  ;;  %v563_v22 = vld [vmem:[#allocation2 + $0x168] sm:$0x1f] }
  0x4f   : > { %379 = vst.msk [vmem:[#allocation2 + $0x248] sm:$0x1f] %vm240_vm1, %v346_v62  ;;  %v2201_v62 = vld [vmem:[#allocation2 + $0x130] sm:$0xff] }
  0x50   : > { %380 = vst.msk [vmem:[#allocation2 + $0x250] sm:$0xff] %vm238_vm0, %v347_v63  ;;  %v557_v63 = vld [vmem:[#allocation2 + $0x138] sm:$0x1f] }
  0x51   : > { %381 = vst.msk [vmem:[#allocation2 + $0x258] sm:$0x1f] %vm240_vm1, %v348_v0  ;;  %v2203_v0 = vld [vmem:[#allocation2 + $0x140] sm:$0xff] }
  0x52   : > { %382 = vst.msk [vmem:[#allocation2 + $0x260] sm:$0xff] %vm238_vm0, %v349_v2  ;;  %v359_v2 = vld [vmem:[%s1976_s16 + $0xb2] sm:$0xff] }
  0x53   : > { %383 = vst.msk [vmem:[#allocation2 + $0x268] sm:$0x1f] %vm240_vm1, %v350_v8  ;;  %v2215_v8 = vmul.f32 %v2113_v1, %v489_v26  ;;  %v577_v26 = vmul.f32 %v2120_v7, %v550_v44  ;;  %v568_v44 = vld [vmem:[#allocation2 + $0x190] sm:$0xff] }
  0x54   : > { %384 = vst.msk [vmem:[#allocation2 + $0x270] sm:$0xff] %vm238_vm0, %v351_v13  ;;  %v2220_v13 = vld [vmem:[#allocation2 + $0x150] sm:$0xff] }
  0x55   : > { %385 = vst.msk [vmem:[#allocation2 + $0x278] sm:$0x1f] %vm240_vm1, %v352_v18  ;;  %v2231_v18 = vmul.f32 %v2113_v1, %v493_v35  ;;  %v402_v35 = vld [vmem:[%s1976_s16 + $0x3] sm:$0xff]  ;;  %v2255_v1 = vmul.f32 %v2120_v7, %v2184_v53 }
  0x56   : > { %386 = vst.msk [vmem:[#allocation2 + $0x280] sm:$0xff] %vm238_vm0, %v353_v23  ;;  %v362_v23 = vld [vmem:[%s1976_s16 + $0xca] sm:$0x1f] }
  0x57   : > { %3237 = vst [vmem:[#allocation3_spill] sm:$0xff] %v2174_v48  ;;  %v1191_v48 = vld [vmem:[#allocation2 + $0x138] sm:$0x1f] }
  0x58   : > { %3238 = vst [vmem:[#allocation4_spill] sm:$0xff] %v2177_v49 }
  0x59   : > { %3239 = vst [vmem:[#allocation5_spill] sm:$0xff] %v2180_v50 }
  0x5a   : > { %387 = vst.msk [vmem:[#allocation2 + $0x288] sm:$0x1f] %vm240_vm1, %v354_v28  ;;  %v564_v28 = vld [vmem:[#allocation2 + $0x170] sm:$0xff] }
  0x5b   : > { %3240 = vst [vmem:[#allocation6_spill] sm:$0xff] %v2190_v57 }
  0x5c   : > { %3241 = vst [vmem:[#allocation7_spill] sm:$0xff] %v2193_v58 }
  0x5d   : > { %3242 = vst [vmem:[#allocation8_spill] sm:$0xff] %v2196_v59 }
  0x5e   : > { %3243 = vst [vmem:[#allocation9_spill] sm:$0xff] %v2199_v60 }
  0x5f   : > { %388 = vst.msk [vmem:[#allocation2 + $0x290] sm:$0xff] %vm238_vm0, %v355_v37  ;;  %v2251_v37 = vmul.f32 %v2120_v7, %v553_v52  ;;  %v2267_v52 = vmul.f32 %v2120_v7, %v557_v63  ;;  %v2283_v63 = vmul.f32 %v2120_v7, %v561_v20  ;;  %v2299_v20 = vmul.f32 %v2120_v7, %v565_v33  ;;  %v630_v33 = vld [vmem:[#allocation2 + $0x208] sm:$0x1f] }
  0x60   : > { %3244 = vst [vmem:[#allocation10_spill] sm:$0xff] %v2209_v4  ;;  %v2308_v4 = vmul.f32 %v2120_v7, %v567_v43 }
  0x61   : > { %3245 = vst [vmem:[#allocation11_spill] sm:$0xff] %v2212_v6  ;;  %v405_v6 = vld [vmem:[%s1976_s16 + $0x1b] sm:$0x1f] }
  0x62   : > { %3246 = vst [vmem:[#allocation12_spill] sm:$0xff] %v2215_v8  ;;  %v629_v8 = vld [vmem:[#allocation2 + $0x200] sm:$0xff] }
  0x63   : > { %3247 = vst [vmem:[#allocation13_spill] sm:$0xff] %v2218_v10  ;;  %v2296_v10 = vmul.f32 %v2120_v7, %v564_v28  ;;  %v2314_v28 = vmul.f32 %v2120_v7, %v569_v45  ;;  %v2330_v45 = vmul.f32 %v2120_v7, %v573_v12  ;;  %v605_v12 = vadd.f32 %v579_v36, %v2146_v31  ;;  %v409_v31 = vld [vmem:[%s1976_s16 + $0x3b] sm:$0x1f] }
  0x64   : > { %389 = vst.msk [vmem:[#allocation2 + $0x298] sm:$0x1f] %vm240_vm1, %v356_v46  ;;  %v403_v46 = vld [vmem:[%s1976_s16 + $0xb] sm:$0x1f] }
  0x65   : > { %3248 = vst [vmem:[#allocation14_spill] sm:$0xff] %v2225_v16  ;;  %v2293_v16 = vmul.f32 %v2120_v7, %v563_v22  ;;  %v2311_v22 = vmul.f32 %v2120_v7, %v568_v44 }
  0x66   : > { %3249 = vst [vmem:[#allocation15_spill] sm:$0xff] %v2228_v17  ;;  %v572_v17 = vld [vmem:[#allocation2 + $0x1b0] sm:$0xff] }
  0x67   : > { %3250 = vst [vmem:[#allocation16_spill] sm:$0xff] %v2231_v18  ;;  %v570_v18 = vld [vmem:[#allocation2 + $0x1a0] sm:$0xff]  ;;  %v2327_v44 = vmul.f32 %v2120_v7, %v572_v17  ;;  %v604_v17 = vadd.f32 %v578_v27, %v2142_v30 }
  0x68   : > { %3251 = vst [vmem:[#allocation17_spill] sm:$0xff] %v2234_v19  ;;  %v2286_v19 = vmul.f32 %v2120_v7, %v562_v21  ;;  %v2302_v21 = vmul.f32 %v2120_v7, %v566_v34  ;;  %v407_v34 = vld [vmem:[%s1976_s16 + $0x2b] sm:$0x1f]  ;;  %v410_v27 = vld [vmem:[%s1976_s16 + $0x43] sm:$0xff] }
  0x69   : > { %390 = vst.msk [vmem:[#allocation2 + $0x2a0] sm:$0xff] %vm238_vm0, %v357_v55  ;;  %v2264_v55 = vmul.f32 %v2120_v7, %v2201_v62 }
  0x6a   : > { %3252 = vst [vmem:[#allocation18_spill] sm:$0xff] %v2239_v24  ;;  %v2280_v24 = vmul.f32 %v2120_v7, %v2220_v13 }
  0x6b   : > { %3253 = vst [vmem:[#allocation19_spill] sm:$0xff] %v2242_v25  ;;  %v571_v25 = vld [vmem:[#allocation2 + $0x1a8] sm:$0x1f] }
  0x6c   : > { %391 = vst.msk [vmem:[#allocation2 + $0x2a8] sm:$0x1f] %vm240_vm1, %v358_v56  ;;  %v2271_v56 = vmul.f32 %v2120_v7, %v2203_v0  ;;  %v2324_v43 = vmul.f32 %v2120_v7, %v571_v25 }
  0x6d   : > { %392 = vst.msk [vmem:[#allocation2 + $0x2b0] sm:$0xff] %vm238_vm0, %v359_v2  ;;  %v468_v2 = vld [vmem:[%s2095_s20 + $0x4] sm:$0xf] }
  0x6e   : > { %3254 = vst [vmem:[#allocation20_spill] sm:$0xff] %v2271_v56 }
  0x6f   : > { %3255 = vst [vmem:[#allocation21_spill] sm:$0xff] %v2274_v54 }
  0x70   : > { %393 = vst.msk [vmem:[#allocation2 + $0x2b8] sm:$0x1f] %vm240_vm1, %v360_v3  ;;  %v2290_v3 = vperm.slane %v2104_v61, 2 }
  0x71   : > { %3256 = vst [vmem:[#allocation22_spill] sm:$0xff] %v2280_v24  ;;  %v422_v24 = vld [vmem:[%s1976_s16 + $0xa3] sm:$0xff] }
  0x72   : > { %3257 = vst [vmem:[#allocation23_spill] sm:$0xff] %v2283_v63  ;;  %v656_v25 = vmul.f32 %v2290_v3, %v629_v8 }
  0x73   : > { %3258 = vst [vmem:[#allocation24_spill] sm:$0xff] %v2286_v19 }
  0x74   : > { %394 = vst.msk [vmem:[#allocation2 + $0x2c0] sm:$0xff] %vm238_vm0, %v361_v15  ;;  %v404_v15 = vld [vmem:[%s1976_s16 + $0x13] sm:$0xff] }
  0x75   : > { %3259 = vst [vmem:[#allocation25_spill] sm:$0xff] %v2293_v16  ;;  %v417_v16 = vld [vmem:[%s1976_s16 + $0x7b] sm:$0x1f] }
  0x76   : > { %3260 = vst [vmem:[#allocation26_spill] sm:$0xff] %v2296_v10 }
  0x77   : > { %3261 = vst [vmem:[#allocation27_spill] sm:$0xff] %v2299_v20  ;;  %v631_v20 = vld [vmem:[#allocation2 + $0x210] sm:$0xff] }
  0x78   : > { %3262 = vst [vmem:[#allocation28_spill] sm:$0xff] %v2302_v21  ;;  %v2318_v21 = vperm.slane %v468_v2, 0 }
  0x79   : > { %395 = vst.msk [vmem:[#allocation2 + $0x2c8] sm:$0x1f] %vm240_vm1, %v362_v23  ;;  %v2321_v23 = vmul.f32 %v2120_v7, %v570_v18  ;;  %v469_v18 = vld [vmem:[%s2095_s20 + $0x8] sm:$0xf] }
  0x7a   : > { %3263 = vst [vmem:[#allocation29_spill] sm:$0xff] %v2308_v4  ;;  %v632_v4 = vld [vmem:[#allocation2 + $0x218] sm:$0x1f]  ;;  %v815_v8 = vmul.f32 %v2318_v21, %v2117_v5  ;;  %v2363_v36 = vperm.slane %v469_v18, 0  ;;  %v411_v5 = vld [vmem:[%s1976_s16 + $0x4b] sm:$0x1f] }
  0x7b   : > { %3264 = vst [vmem:[#allocation30_spill] sm:$0xff] %v2311_v22  ;;  %v575_v22 = vld [vmem:[#allocation2 + $0x1c8] sm:$0x1f] }
  0x7c   : > { %3265 = vst [vmem:[#allocation31_spill] sm:$0xff] %v2314_v28  ;;  %v574_v28 = vld [vmem:[#allocation2 + $0x1c0] sm:$0xff]  ;;  %v2352_v30 = vmul.f32 %v2120_v7, %v575_v22  ;;  %v606_v22 = vadd.f32 %v2251_v37, %v2149_v32 }
  0x7d   : > { %435 = vst.msk [vmem:[#allocation2 + $0x300] sm:$0xff] %vm238_vm0, %v402_v35  ;;  %v406_v35 = vld [vmem:[%s1976_s16 + $0x23] sm:$0xff] }
  0x7e   : > { %3266 = vst [vmem:[#allocation32_spill] sm:$0xff] %v2321_v23  ;;  %v603_v23 = vadd.f32 %v577_v26, %v2139_v29  ;;  %v2349_v29 = vmul.f32 %v2120_v7, %v574_v28  ;;  %v633_v26 = vld [vmem:[#allocation2 + $0x220] sm:$0xff]  ;;  %v2367_v7 = vmul.f32 %v2318_v21, %v2124_v9 }
  0x7f   : > { %3267 = vst [vmem:[#allocation33_spill] sm:$0xff] %v2324_v43  ;;  %v657_v43 = vmul.f32 %v2290_v3, %v630_v33  ;;  %v2374_v33 = vperm.slane %v468_v2, 3 }
  0x80   : > { %3268 = vst [vmem:[#allocation34_spill] sm:$0xff] %v2327_v44  ;;  %v2342_v44 = vperm.slane %v468_v2, 1  ;;  %v682_v28 = vadd.f32 %v656_v25, %v603_v23 }
  0x81   : > { %3269 = vst [vmem:[#allocation35_spill] sm:$0xff] %v2330_v45  ;;  %v408_v45 = vld [vmem:[%s1976_s16 + $0x33] sm:$0xff]  ;;  %v683_v23 = vadd.f32 %v657_v43, %v604_v17  ;;  %v2402_v43 = vmul.f32 %v2363_v36, %v2124_v9 }
  0x82   : > { %436 = vst.msk [vmem:[#allocation2 + $0x308] sm:$0x1f] %vm240_vm1, %v403_v46  ;;  %v2344_v46 = vperm.slane %v468_v2, 2  ;;  %v869_v9 = vld [vmem:[#allocation2 + $0x118] sm:$0x1f] }
  0x83   : > { %437 = vst.msk [vmem:[#allocation2 + $0x310] sm:$0xff] %vm238_vm0, %v404_v15  ;;  %v658_v15 = vmul.f32 %v2290_v3, %v631_v20 }
  0x84   : > { %438 = vst.msk [vmem:[#allocation2 + $0x318] sm:$0x1f] %vm240_vm1, %v405_v6  ;;  %v2357_v6 = vperm.slane %v2104_v61, 3  ;;  %v659_v61 = vmul.f32 %v2290_v3, %v632_v4  ;;  %v708_v32 = vld [vmem:[#allocation2 + $0x300] sm:$0xff]  ;;  %v895_v4 = vmul.f32 %v2342_v44, %v2182_v51  ;;  %v975_v37 = vmul.f32 %v2344_v46, %v631_v20 }
  0x85   : > { %3270 = vst [vmem:[#allocation36_spill] sm:$0xff] %v2349_v29  ;;  %v2383_v29 = vld [vmem:[%s2095_s20 + $0xc] sm:$0xf]  ;;  %v684_v2 = vadd.f32 %v658_v15, %v605_v12  ;;  %v2396_v60 = vmul.f32 %v2344_v46, %v633_v26  ;;  %v414_v51 = vld [vmem:[%s1976_s16 + $0x63] sm:$0xff]  ;;  %v789_v12 = vld [vmem:[#allocation2 + $0x18] sm:$0x1f] }
  0x86   : > { %3271 = vst [vmem:[#allocation37_spill] sm:$0xff] %v2352_v30  ;;  %v412_v30 = vld [vmem:[%s1976_s16 + $0x53] sm:$0xff]  ;;  %v2405_v15 = vadd.f32 %v659_v61, %v606_v22  ;;  %v2415_v59 = vperm.slane %v2383_v29, 0  ;;  %v2431_v57 = vperm.slane %v2383_v29, 1 }
  0x87   : > { %439 = vst.msk [vmem:[#allocation2 + $0x320] sm:$0xff] %vm238_vm0, %v406_v35  ;;  %v607_v35 = vadd.f32 %v2255_v1, %v2155_v38  ;;  %v735_v38 = vmul.f32 %v2357_v6, %v708_v32  ;;  %v2391_v1 = vperm.slane %v469_v18, 2  ;;  %v415_v32 = vld [vmem:[%s1976_s16 + $0x6b] sm:$0x1f]  ;;  %v416_v22 = vld [vmem:[%s1976_s16 + $0x73] sm:$0xff] }
  0x88   : > { %440 = vst.msk [vmem:[#allocation2 + $0x328] sm:$0x1f] %vm240_vm1, %v407_v34  ;;  %v2376_v34 = vperm.slane %v469_v18, 1 }
  0x89   : > { %441 = vst.msk [vmem:[#allocation2 + $0x330] sm:$0xff] %vm238_vm0, %v408_v45  ;;  %v413_v45 = vld [vmem:[%s1976_s16 + $0x5b] sm:$0x1f]  ;;  %v709_v25 = vld [vmem:[#allocation2 + $0x308] sm:$0x1f]  ;;  %v761_v10 = vadd.f32 %v735_v38, %v682_v28  ;;  %v816_v38 = vmul.f32 %v2318_v21, %v789_v12  ;;  %v2428_v19 = vmul.f32 %v2391_v1, %v633_v26 }
  0x8a   : > { %442 = vst.msk [vmem:[#allocation2 + $0x338] sm:$0x1f] %vm240_vm1, %v409_v31  ;;  %v897_v31 = vmul.f32 %v2342_v44, %v2184_v53  ;;  %v1028_v20 = vld [vmem:[#allocation2 + $0x310] sm:$0xff]  ;;  %v736_v17 = vmul.f32 %v2357_v6, %v709_v25 }
  0x8b   : > { %443 = vst.msk [vmem:[#allocation2 + $0x340] sm:$0xff] %vm238_vm0, %v410_v27  ;;  %v660_v27 = vmul.f32 %v2290_v3, %v633_v26  ;;  %v737_v25 = vmul.f32 %v1028_v20, %v2357_v6  ;;  %v841_v58 = vadd.f32 %v815_v8, %v761_v10  ;;  %v2443_v8 = vld [vmem:[#allocation2 + $0x230] sm:$0xff]  ;;  %v1029_v12 = vld [vmem:[#allocation2 + $0x318] sm:$0x1f] }
  0x8c   : > { %444 = vst.msk [vmem:[#allocation2 + $0x348] sm:$0x1f] %vm240_vm1, %v411_v5  ;;  %v2412_v5 = vmul.f32 %v2376_v34, %v2184_v53  ;;  %v762_v28 = vadd.f32 %v736_v17, %v683_v23  ;;  %v419_v23 = vld [vmem:[%s1976_s16 + $0x8b] sm:$0x1f] }
  0x8d   : > { %445 = vst.msk [vmem:[#allocation2 + $0x350] sm:$0xff] %vm238_vm0, %v412_v30  ;;  %v2422_v30 = vperm.slane %v469_v18, 3  ;;  %v686_v53 = vadd.f32 %v660_v27, %v607_v35  ;;  %v763_v63 = vadd.f32 %v737_v25, %v684_v2  ;;  %v418_v18 = vld [vmem:[%s1976_s16 + $0x83] sm:$0xff]  ;;  %v896_v35 = vmul.f32 %v2342_v44, %v869_v9  ;;  %v792_v9 = vld [vmem:[#allocation2 + $0x30] sm:$0xff] }
  0x8e   : > { %446 = vst.msk [vmem:[#allocation2 + $0x358] sm:$0x1f] %vm240_vm1, %v413_v45  ;;  %v2420_v61 = vld [vmem:[#allocation2 + $0x320] sm:$0xff]  ;;  %v949_v45 = vld [vmem:[#allocation2 + $0x218] sm:$0x1f]  ;;  %v842_v17 = vadd.f32 %v816_v38, %v762_v28  ;;  %v921_v26 = vadd.f32 %v895_v4, %v841_v58  ;;  %v2448_v2 = vmul.f32 %v2415_v59, %v2126_v11  ;;  %v2458_v28 = vperm.slane %v2383_v29, 2 }
  0x8f   : > { %447 = vst.msk [vmem:[#allocation2 + $0x360] sm:$0xff] %vm238_vm0, %v414_v51  ;;  %v2439_v51 = vmul.f32 %v2363_v36, %v2126_v11  ;;  %v739_v10 = vmul.f32 %v2420_v61, %v2357_v6  ;;  %v843_v27 = vadd.f32 %v2367_v7, %v763_v63  ;;  %v420_v25 = vld [vmem:[%s1976_s16 + $0x93] sm:$0xff]  ;;  %v976_v4 = vmul.f32 %v2344_v46, %v949_v45  ;;  %v421_v63 = vld [vmem:[%s1976_s16 + $0x9b] sm:$0x1f] }
  0x90   : > { %448 = vst.msk [vmem:[#allocation2 + $0x368] sm:$0x1f] %vm240_vm1, %v415_v32  ;;  %v2453_v32 = vmul.f32 %v2376_v34, %v2201_v62  ;;  %v922_v58 = vadd.f32 %v896_v35, %v842_v17  ;;  %v1001_v7 = vadd.f32 %v975_v37, %v921_v26  ;;  %v2465_v38 = vperm.slane %v2383_v29, 3  ;;  %v423_v37 = vld [vmem:[%s1976_s16 + $0xab] sm:$0x1f]  ;;  %v424_v29 = vld [vmem:[%s1976_s16 + $0xb3] sm:$0xff] }
  0x91   : > { %449 = vst.msk [vmem:[#allocation2 + $0x370] sm:$0xff] %vm238_vm0, %v416_v22  ;;  %v765_v11 = vadd.f32 %v739_v10, %v686_v53  ;;  %v1055_v22 = vmul.f32 %v2374_v33, %v1028_v20  ;;  %v923_v50 = vadd.f32 %v897_v31, %v843_v27  ;;  %v1056_v45 = vmul.f32 %v2374_v33, %v1029_v12 }
  0x92   : > { %450 = vst.msk [vmem:[#allocation2 + $0x378] sm:$0x1f] %vm240_vm1, %v417_v16  ;;  %v1109_v16 = vld [vmem:[#allocation2 + $0x28] sm:$0x1f]  ;;  %v1002_v17 = vadd.f32 %v976_v4, %v922_v58  ;;  %v2472_v53 = vmul.f32 %v2391_v1, %v2443_v8  ;;  %v2480_v31 = vmul.f32 %v2431_v57, %v2201_v62  ;;  %v1057_v10 = vmul.f32 %v2420_v61, %v2374_v33  ;;  %v2491_v4 = vld [vmem:[#allocation2 + $0x240] sm:$0xff] }
  0x93   : > { %451 = vst.msk [vmem:[#allocation2 + $0x380] sm:$0xff] %vm238_vm0, %v418_v18  ;;  %v819_v18 = vmul.f32 %v2318_v21, %v792_v9  ;;  %v1081_v20 = vadd.f32 %v1055_v22, %v1001_v7  ;;  %v1003_v35 = vadd.f32 %v2396_v60, %v923_v50  ;;  %v1136_v12 = vmul.f32 %v2363_v36, %v1109_v16  ;;  %v711_v9 = vld [vmem:[#allocation2 + $0x318] sm:$0x1f] }
  0x94   : > { %452 = vst.msk [vmem:[#allocation2 + $0x388] sm:$0x1f] %vm240_vm1, %v419_v23  ;;  %v1189_v23 = vld [vmem:[#allocation2 + $0x128] sm:$0x1f]  ;;  %v1082_v26 = vadd.f32 %v1056_v45, %v1002_v17  ;;  %v2489_v27 = vmul.f32 %v2415_v59, %v2130_v14  ;;  %v425_v50 = vld [vmem:[%s1976_s16 + $0xbb] sm:$0x1f]  ;;  %v2498_v22 = vmul.f32 %v2431_v57, %v2203_v0  ;;  %v738_v14 = vmul.f32 %v2357_v6, %v711_v9 }
  0x95   : > { %453 = vst.msk [vmem:[#allocation2 + $0x390] sm:$0xff] %vm238_vm0, %v420_v25  ;;  %v791_v25 = vld [vmem:[#allocation2 + $0x28] sm:$0x1f]  ;;  %v845_v58 = vadd.f32 %v819_v18, %v765_v11  ;;  %v1161_v60 = vadd.f32 %v2402_v43, %v1081_v20  ;;  %v1083_v7 = vadd.f32 %v1057_v10, %v1003_v35  ;;  %v2505_v16 = vmul.f32 %v2458_v28, %v2443_v8  ;;  %v232_v20 = vld [vmem:[%s1976_s16 + $0xd0] sm:$0xff] }
  0x96   : > { %454 = vst.msk [vmem:[#allocation2 + $0x398] sm:$0x1f] %vm240_vm1, %v421_v63  ;;  %v1269_v63 = vld [vmem:[#allocation2 + $0x228] sm:$0x1f]  ;;  %v1216_v17 = vmul.f32 %v2376_v34, %v1189_v23  ;;  %v899_v43 = vmul.f32 %v2342_v44, %v2201_v62  ;;  %v2514_v35 = vld [vmem:[#allocation2 + $0x330] sm:$0xff]  ;;  %v818_v23 = vmul.f32 %v2318_v21, %v791_v25  ;;  %v2523_v9 = vmul.f32 %v2458_v28, %v2491_v4 }
  0x97   : > { %455 = vst.msk [vmem:[#allocation2 + $0x3a0] sm:$0xff] %vm238_vm0, %v422_v24  ;;  %v426_v11 = vld [vmem:[%s1976_s16 + $0xc3] sm:$0xff]  ;;  %v1162_v24 = vadd.f32 %v1136_v12, %v1082_v26  ;;  %v427_v18 = vld [vmem:[%s1976_s16 + $0xcb] sm:$0x1f]  ;;  %v1163_v10 = vadd.f32 %v2439_v51, %v1083_v7  ;;  %v764_v26 = vadd.f32 %v738_v14, %v2405_v15  ;;  %v233_v51 = vld [vmem:[%s1976_s16 + $0xd8] sm:$0x1f]  ;;  %v1059_v54 = vmul.f32 %v2514_v35, %v2374_v33 }
  0x98   : > { %456 = vst.msk [vmem:[#allocation2 + $0x3a8] sm:$0x1f] %vm240_vm1, %v423_v37  ;;  %v871_v45 = vld [vmem:[#allocation2 + $0x128] sm:$0x1f]  ;;  %v1241_v37 = vadd.f32 %v2412_v5, %v1161_v60  ;;  %v925_v60 = vadd.f32 %v899_v43, %v845_v58  ;;  %v298_v7 = vld [vmem:[%s1976_s16 + $0xd1] sm:$0xff]  ;;  %v1377_v58 = vmul.f32 %v2514_v35, %v2422_v30  ;;  %v979_v43 = vmul.f32 %v2344_v46, %v2443_v8 }
  0x99   : > { %457 = vst.msk [vmem:[#allocation2 + $0x3b0] sm:$0xff] %vm238_vm0, %v424_v29  ;;  %v1242_v62 = vadd.f32 %v1216_v17, %v1162_v24  ;;  %v1296_v29 = vmul.f32 %v2391_v1, %v1269_v63  ;;  %v1349_v12 = vld [vmem:[#allocation2 + $0x328] sm:$0x1f]  ;;  %v299_v15 = vld [vmem:[%s1976_s16 + $0xd9] sm:$0x1f]  ;;  %v844_v14 = vadd.f32 %v818_v23, %v764_v26  ;;  %v898_v24 = vmul.f32 %v2342_v44, %v871_v45 }
  0x9a   : > { %458 = vst.msk [vmem:[#allocation2 + $0x3b8] sm:$0x1f] %vm240_vm1, %v425_v50  ;;  %v951_v5 = vld [vmem:[#allocation2 + $0x228] sm:$0x1f]  ;;  %v1321_v25 = vadd.f32 %v2428_v19, %v1241_v37  ;;  %v1243_v50 = vadd.f32 %v2453_v32, %v1163_v10  ;;  %v363_v63 = vld [vmem:[%s1976_s16 + $0xd2] sm:$0xff]  ;;  %v1375_v17 = vmul.f32 %v2422_v30, %v2420_v61  ;;  %v2540_v19 = vld [vmem:[#allocation2 + $0x40] sm:$0xff]  ;;  %v1376_v32 = vmul.f32 %v2422_v30, %v1349_v12 }
  0x9b   : > { %459 = vst.msk [vmem:[#allocation2 + $0x3c0] sm:$0xff] %vm238_vm0, %v426_v11  ;;  %v1322_v49 = vadd.f32 %v1296_v29, %v1242_v62  ;;  %v1031_v11 = vld [vmem:[#allocation2 + $0x328] sm:$0x1f]  ;;  %v1429_v45 = vld [vmem:[#allocation2 + $0x38] sm:$0x1f]  ;;  %v2545_v61 = vld [vmem:[#allocation2 + $0x340] sm:$0xff]  ;;  %v924_v10 = vadd.f32 %v898_v24, %v844_v14  ;;  %v978_v26 = vmul.f32 %v2344_v46, %v951_v5  ;;  %v2551_v62 = vmul.f32 %v2465_v38, %v2514_v35 }
  0x9c   : > { %460 = vst.msk [vmem:[#allocation2 + $0x3c8] sm:$0x1f] %vm240_vm1, %v427_v18  ;;  %v1509_v18 = vld [vmem:[#allocation2 + $0x138] sm:$0x1f]  ;;  %v1323_v37 = vadd.f32 %v2472_v53, %v1243_v50  ;;  %v1401_v23 = vadd.f32 %v1375_v17, %v1321_v25  ;;  %v1005_v12 = vadd.f32 %v979_v43, %v925_v60  ;;  %v634_v53 = vld [vmem:[#allocation2 + $0x228] sm:$0x1f]  ;;  %v1058_v24 = vmul.f32 %v2374_v33, %v1031_v11 }
  0x9d   : > { %266 = vst.msk [vmem:[#allocation2 + $0xd0] sm:$0xff] %vm238_vm0, %v232_v20  ;;  %v1589_v20 = vld [vmem:[#allocation2 + $0x238] sm:$0x1f]  ;;  %v1402_v50 = vadd.f32 %v1376_v32, %v1322_v49  ;;  %v1004_v25 = vadd.f32 %v978_v26, %v924_v10  ;;  %v1456_v60 = vmul.f32 %v2415_v59, %v1429_v45  ;;  %v2563_v43 = vmul.f32 %v2465_v38, %v2545_v61 }
  0x9e   : > { %267 = vst.msk [vmem:[#allocation2 + $0xd8] sm:$0x1f] %vm240_vm1, %v233_v51  ;;  %v1111_v29 = vld [vmem:[#allocation2 + $0x38] sm:$0x1f]  ;;  %v1403_v14 = vadd.f32 %v1377_v58, %v1323_v37  ;;  %v1085_v56 = vadd.f32 %v1059_v54, %v1005_v12  ;;  %v234_v58 = vld [vmem:[%s1976_s16 + $0xe0] sm:$0xff]  ;;  %v2572_v11 = vmul.f32 %v2458_v28, %v1589_v20  ;;  %v1481_v54 = vadd.f32 %v2448_v2, %v1401_v23 }
  0x9f   : > { %331 = vst.msk [vmem:[#allocation2 + $0x1d0] sm:$0xff] %vm238_vm0, %v298_v7  ;;  %v364_v5 = vld [vmem:[%s1976_s16 + $0xda] sm:$0x1f]  ;;  %v1139_v7 = vmul.f32 %v2363_v36, %v2540_v19  ;;  %v1084_v32 = vadd.f32 %v1058_v24, %v1004_v25  ;;  %v1138_v45 = vmul.f32 %v2363_v36, %v1111_v29  ;;  %v713_v12 = vld [vmem:[#allocation2 + $0x328] sm:$0x1f]  ;;  %v1482_v25 = vadd.f32 %v1456_v60, %v1402_v50  ;;  %v2598_v60 = vld [vmem:[#allocation2 + $0x50] sm:$0xff] }
  0xa0   : > { %v1669_v51 = vld [vmem:[#allocation2 + $0x338] sm:$0x1f]  ;;  %332 = vst.msk [vmem:[#allocation2 + $0x1d8] sm:$0x1f] %vm240_vm1, %v299_v15  ;;  %v1536_v15 = vmul.f32 %v2431_v57, %v1509_v18  ;;  %v1219_v18 = vmul.f32 %v2376_v34, %v2203_v0  ;;  %v235_v20 = vld [vmem:[%s1976_s16 + $0xe8] sm:$0x1f]  ;;  %v1483_v24 = vadd.f32 %v2489_v27, %v1403_v14  ;;  %v1218_v2 = vmul.f32 %v2376_v34, %v1191_v48 }
  0xa1   : > { %v428_v17 = vld [vmem:[%s1976_s16 + $0xd3] sm:$0xff]  ;;  %396 = vst.msk [vmem:[#allocation2 + $0x2d0] sm:$0xff] %vm238_vm0, %v363_v63  ;;  %v429_v49 = vld [vmem:[%s1976_s16 + $0xdb] sm:$0x1f]  ;;  %v2578_v63 = vmul.f32 %v2465_v38, %v1669_v51  ;;  %v1165_v26 = vadd.f32 %v1139_v7, %v1085_v56  ;;  %v300_v29 = vld [vmem:[%s1976_s16 + $0xe1] sm:$0xff]  ;;  %v1299_v0 = vmul.f32 %v2391_v1, %v2491_v4  ;;  %v608_v7 = vadd.f32 %v2258_v42, %v2158_v39 }
  0xa2   : > { %v1271_v37 = vld [vmem:[#allocation2 + $0x238] sm:$0x1f]  ;;  %397 = vst.msk [vmem:[#allocation2 + $0x2d8] sm:$0x1f] %vm240_vm1, %v364_v5  ;;  %v1164_v5 = vadd.f32 %v1138_v45, %v1084_v32  ;;  %v301_v23 = vld [vmem:[%s1976_s16 + $0xe9] sm:$0x1f]  ;;  %v1561_v39 = vadd.f32 %v2480_v31, %v1481_v54  ;;  %v1379_v45 = vmul.f32 %v2545_v61, %v2422_v30 }
  0xa3   : > { %v1351_v10 = vld [vmem:[#allocation2 + $0x338] sm:$0x1f]  ;;  %461 = vst.msk [vmem:[#allocation2 + $0x3d0] sm:$0xff] %vm238_vm0, %v428_v17  ;;  %v1431_v51 = vld [vmem:[#allocation2 + $0x48] sm:$0x1f]  ;;  %v1245_v56 = vadd.f32 %v1219_v18, %v1165_v26  ;;  %v661_v17 = vmul.f32 %v2290_v3, %v634_v53  ;;  %v1298_v48 = vmul.f32 %v2391_v1, %v1271_v37  ;;  %v1563_v18 = vadd.f32 %v2498_v22, %v1483_v24  ;;  %v2609_v31 = vld [vmem:[#allocation2 + $0x250] sm:$0xff] }
  0xa4   : > { %462 = vst.msk [vmem:[#allocation2 + $0x3d8] sm:$0x1f] %vm240_vm1, %v429_v49  ;;  %v365_v27 = vld [vmem:[%s1976_s16 + $0xe2] sm:$0xff]  ;;  %v1244_v50 = vadd.f32 %v1218_v2, %v1164_v5  ;;  %v1378_v14 = vmul.f32 %v2422_v30, %v1351_v10  ;;  %v740_v49 = vmul.f32 %v2357_v6, %v713_v12  ;;  %v793_v32 = vld [vmem:[#allocation2 + $0x38] sm:$0x1f]  ;;  %v1562_v10 = vadd.f32 %v1536_v15, %v1482_v25  ;;  %v236_v15 = vld [vmem:[%s1976_s16 + $0xf0] sm:$0xff] }
  0xa5   : > { %268 = vst.msk [vmem:[#allocation2 + $0xe0] sm:$0xff] %vm238_vm0, %v234_v58  ;;  %v1511_v42 = vld [vmem:[#allocation2 + $0x148] sm:$0x1f]  ;;  %v1325_v58 = vadd.f32 %v1299_v0, %v1245_v56  ;;  %v687_v26 = vadd.f32 %v661_v17, %v608_v7  ;;  %v873_v5 = vld [vmem:[#allocation2 + $0x138] sm:$0x1f]  ;;  %v1459_v56 = vmul.f32 %v2415_v59, %v2598_v60  ;;  %v820_v0 = vmul.f32 %v2318_v21, %v793_v32 }
  0xa6   : > { %269 = vst.msk [vmem:[#allocation2 + $0xe8] sm:$0x1f] %vm240_vm1, %v235_v20  ;;  %v1591_v53 = vld [vmem:[#allocation2 + $0x248] sm:$0x1f]  ;;  %v1324_v12 = vadd.f32 %v1298_v48, %v1244_v50  ;;  %v1458_v20 = vmul.f32 %v2415_v59, %v1431_v51  ;;  %v1538_v24 = vmul.f32 %v2431_v57, %v1511_v42  ;;  %v953_v7 = vld [vmem:[#allocation2 + $0x238] sm:$0x1f]  ;;  %v1641_v50 = vadd.f32 %v2505_v16, %v1561_v39 }
  0xa7   : > { %333 = vst.msk [vmem:[#allocation2 + $0x1e0] sm:$0xff] %vm238_vm0, %v300_v29  ;;  %v366_v37 = vld [vmem:[%s1976_s16 + $0xea] sm:$0x1f]  ;;  %v1405_v2 = vadd.f32 %v1379_v45, %v1325_v58  ;;  %v766_v29 = vadd.f32 %v740_v49, %v687_v26  ;;  %v1618_v51 = vmul.f32 %v2458_v28, %v1591_v53  ;;  %v237_v17 = vld [vmem:[%s1976_s16 + $0xf8] sm:$0x1f]  ;;  %v900_v32 = vmul.f32 %v2342_v44, %v873_v5  ;;  %v2632_v58 = vld [vmem:[#allocation2 + $0x350] sm:$0xff] }
  0xa8   : > { %334 = vst.msk [vmem:[#allocation2 + $0x1e8] sm:$0x1f] %vm240_vm1, %v301_v23  ;;  %v430_v54 = vld [vmem:[%s1976_s16 + $0xe3] sm:$0xff]  ;;  %v431_v22 = vld [vmem:[%s1976_s16 + $0xeb] sm:$0x1f]  ;;  %v1404_v25 = vadd.f32 %v1378_v14, %v1324_v12  ;;  %v1539_v23 = vmul.f32 %v2431_v57, %v2220_v13  ;;  %v302_v14 = vld [vmem:[%s1976_s16 + $0xf1] sm:$0xff]  ;;  %v1642_v13 = vadd.f32 %v2572_v11, %v1562_v10  ;;  %v1643_v42 = vadd.f32 %v2523_v9, %v1563_v18 }
  0xa9   : > { %398 = vst.msk [vmem:[#allocation2 + $0x2e0] sm:$0xff] %vm238_vm0, %v365_v27  ;;  %v1671_v27 = vld [vmem:[#allocation2 + $0x348] sm:$0x1f]  ;;  %v1485_v48 = vadd.f32 %v1459_v56, %v1405_v2  ;;  %v846_v49 = vadd.f32 %v820_v0, %v766_v29  ;;  %v1033_v45 = vld [vmem:[#allocation2 + $0x338] sm:$0x1f]  ;;  %v609_v16 = vadd.f32 %v2264_v55, %v2162_v40  ;;  %v662_v5 = vmul.f32 %v2290_v3, %v2443_v8 }
  0xaa   : > { %399 = vst.msk [vmem:[#allocation2 + $0x2e8] sm:$0x1f] %vm240_vm1, %v366_v37  ;;  %v1484_v53 = vadd.f32 %v1458_v20, %v1404_v25  ;;  %v303_v39 = vld [vmem:[%s1976_s16 + $0xf9] sm:$0x1f]  ;;  %v980_v37 = vmul.f32 %v2344_v46, %v953_v7  ;;  %v1113_v12 = vld [vmem:[#allocation2 + $0x48] sm:$0x1f]  ;;  %v741_v9 = vmul.f32 %v2514_v35, %v2357_v6  ;;  %v1698_v40 = vmul.f32 %v2465_v38, %v1671_v27 }
  0xab   : > { %463 = vst.msk [vmem:[#allocation2 + $0x3e0] sm:$0xff] %vm238_vm0, %v430_v54  ;;  %v926_v26 = vadd.f32 %v900_v32, %v846_v49  ;;  %v367_v11 = vld [vmem:[%s1976_s16 + $0xf2] sm:$0xff]  ;;  %v368_v10 = vld [vmem:[%s1976_s16 + $0xfa] sm:$0x1f]  ;;  %v1565_v55 = vadd.f32 %v1539_v23, %v1485_v48  ;;  %v1619_v20 = vmul.f32 %v2458_v28, %v2609_v31  ;;  %v1193_v54 = vld [vmem:[#allocation2 + $0x148] sm:$0x1f]  ;;  %v1699_v8 = vmul.f32 %v2465_v38, %v2632_v58 }
  0xac   : > { %464 = vst.msk [vmem:[#allocation2 + $0x3e8] sm:$0x1f] %vm240_vm1, %v431_v22  ;;  %v1564_v18 = vadd.f32 %v1538_v24, %v1484_v53  ;;  %v636_v2 = vld [vmem:[#allocation2 + $0x238] sm:$0x1f]  ;;  %v1060_v56 = vmul.f32 %v2374_v33, %v1033_v45  ;;  %v1273_v29 = vld [vmem:[#allocation2 + $0x248] sm:$0x1f]  ;;  %v688_v22 = vadd.f32 %v662_v5, %v609_v16  ;;  %v1721_v25 = vadd.f32 %v2551_v62, %v1641_v50 }
  0xad   : > { %270 = vst.msk [vmem:[#allocation2 + $0xf0] sm:$0xff] %vm238_vm0, %v236_v15  ;;  %v1006_v35 = vadd.f32 %v980_v37, %v926_v26  ;;  %v1353_v0 = vld [vmem:[#allocation2 + $0x348] sm:$0x1f]  ;;  %v432_v15 = vld [vmem:[%s1976_s16 + $0xf3] sm:$0xff]  ;;  %v1722_v24 = vadd.f32 %v2578_v63, %v1642_v13  ;;  %v1723_v23 = vadd.f32 %v2563_v43, %v1643_v42  ;;  %v1140_v7 = vmul.f32 %v2363_v36, %v1113_v12  ;;  %v874_v27 = vld [vmem:[#allocation2 + $0x140] sm:$0xff] }
  0xae   : > { %271 = vst.msk [vmem:[#allocation2 + $0xf8] sm:$0x1f] %vm240_vm1, %v237_v17  ;;  %v1433_v17 = vld [vmem:[#allocation2 + $0x58] sm:$0x1f]  ;;  %v1644_v48 = vadd.f32 %v1618_v51, %v1564_v18  ;;  %v767_v53 = vadd.f32 %v741_v9, %v688_v22  ;;  %v1645_v63 = vadd.f32 %v1619_v20, %v1565_v55  ;;  %v1220_v43 = vmul.f32 %v2376_v34, %v1193_v54  ;;  %v795_v55 = vld [vmem:[#allocation2 + $0x48] sm:$0x1f] }
  0xaf   : > { %335 = vst.msk [vmem:[#allocation2 + $0x1f0] sm:$0xff] %vm238_vm0, %v302_v14  ;;  %v1086_v49 = vadd.f32 %v1060_v56, %v1006_v35  ;;  %v1513_v32 = vld [vmem:[#allocation2 + $0x158] sm:$0x1f]  ;;  %v821_v14 = vmul.f32 %v2540_v19, %v2318_v21  ;;  %v1300_v50 = vmul.f32 %v2391_v1, %v1273_v29  ;;  %v1380_v13 = vmul.f32 %v2422_v30, %v1353_v0  ;;  %v875_v22 = vld [vmem:[#allocation2 + $0x148] sm:$0x1f] }
  0xb0   : > { %336 = vst.msk [vmem:[#allocation2 + $0x1f8] sm:$0x1f] %vm240_vm1, %v303_v39  ;;  %v715_v45 = vld [vmem:[#allocation2 + $0x338] sm:$0x1f]  ;;  %v901_v39 = vmul.f32 %v2342_v44, %v874_v27  ;;  %v610_v26 = vadd.f32 %v2267_v52, %v2165_v41  ;;  %v1460_v37 = vmul.f32 %v2415_v59, %v1433_v17  ;;  %v1540_v12 = vmul.f32 %v2431_v57, %v1513_v32  ;;  %v1194_v52 = vld [vmem:[#allocation2 + $0x150] sm:$0xff]  ;;  %v2704_v17 = vld [vmem:[#allocation2 + $0x260] sm:$0xff] }
  0xb1   : > { %400 = vst.msk [vmem:[#allocation2 + $0x2f0] sm:$0xff] %vm238_vm0, %v367_v11  ;;  %v433_v62 = vld [vmem:[%s1976_s16 + $0xfb] sm:$0x1f]  ;;  %v1166_v19 = vadd.f32 %v1140_v7, %v1086_v49  ;;  %v847_v16 = vadd.f32 %v821_v14, %v767_v53  ;;  %v663_v5 = vmul.f32 %v2290_v3, %v636_v2  ;;  %v742_v9 = vmul.f32 %v2357_v6, %v715_v45  ;;  %v2708_v49 = vld [vmem:[#allocation2 + $0x160] sm:$0xff]  ;;  %v955_v32 = vld [vmem:[#allocation2 + $0x248] sm:$0x1f] }
  0xb2   : > { %401 = vst.msk [vmem:[#allocation2 + $0x2f8] sm:$0x1f] %vm240_vm1, %v368_v10  ;;  %v1593_v51 = vld [vmem:[#allocation2 + $0x258] sm:$0x1f]  ;;  %v1724_v11 = vadd.f32 %v1698_v40, %v1644_v48  ;;  %v981_v41 = vmul.f32 %v2344_v46, %v2491_v4  ;;  %v1725_v20 = vadd.f32 %v1699_v8, %v1645_v63  ;;  %v1061_v29 = vmul.f32 %v2545_v61, %v2374_v33 }
  0xb3   : > { %v1673_v42 = vld [vmem:[#allocation2 + $0x358] sm:$0x1f]  ;;  %465 = vst.msk [vmem:[#allocation2 + $0x3f0] sm:$0xff] %vm238_vm0, %v432_v15  ;;  %v1246_v10 = vadd.f32 %v1220_v43, %v1166_v19  ;;  %v927_v18 = vadd.f32 %v901_v39, %v847_v16  ;;  %v1620_v54 = vmul.f32 %v2458_v28, %v1593_v51  ;;  %v689_v35 = vadd.f32 %v663_v5, %v610_v26  ;;  %v1035_v51 = vld [vmem:[#allocation2 + $0x348] sm:$0x1f] }
  0xb4   : > { %466 = vst.msk [vmem:[#allocation2 + $0x3f8] sm:$0x1f] %vm240_vm1, %v433_v62  ;;  %v1700_v2 = vmul.f32 %v2465_v38, %v1673_v42  ;;  %v1141_v0 = vmul.f32 %v2598_v60, %v2363_v36  ;;  %v1221_v8 = vmul.f32 %v2376_v34, %v1194_v52  ;;  %v1301_v15 = vmul.f32 %v2391_v1, %v2609_v31 }
  0xb5   : > { %1747 = vst.msk [vmem:[%s2673_s24] sm:$0xff] %vm238_vm0, %v1721_v25  ;;  %v1326_v40 = vadd.f32 %v1300_v50, %v1246_v10  ;;  %v1007_v56 = vadd.f32 %v981_v41, %v927_v18  ;;  %v2701_v25 = vld [vmem:[#allocation2 + $0x60] sm:$0xff]  ;;  %v822_v7 = vmul.f32 %v2318_v21, %v795_v55  ;;  %v664_v14 = vmul.f32 %v2290_v3, %v2491_v4  ;;  %v1115_v4 = vld [vmem:[#allocation2 + $0x58] sm:$0x1f]  ;;  %v956_v18 = vld [vmem:[#allocation2 + $0x250] sm:$0xff] }
  0xb6   : > { %1748 = vst.msk [vmem:[%s2673_s24 + $0x8] sm:$0x1f] %vm240_vm1, %v1722_v24  ;;  %v768_v24 = vadd.f32 %v742_v9, %v689_v35  ;;  %v1381_v45 = vmul.f32 %v2632_v58, %v2422_v30  ;;  %v902_v63 = vmul.f32 %v2342_v44, %v875_v22  ;;  %v743_v43 = vmul.f32 %v2545_v61, %v2357_v6  ;;  %v638_v61 = vld [vmem:[#allocation2 + $0x248] sm:$0x1f]  ;;  %v1275_v22 = vld [vmem:[#allocation2 + $0x258] sm:$0x1f] }
  0xb7   : > { %1749 = vst.msk [vmem:[%s2673_s24 + $0x10] sm:$0xff] %vm238_vm0, %v1723_v23  ;;  %v1406_v27 = vadd.f32 %v1380_v13, %v1326_v40  ;;  %v1087_v48 = vadd.f32 %v1061_v29, %v1007_v56  ;;  %v3272_v23 = vld [vmem:[#allocation20_spill] sm:$0xff]  ;;  %v1461_v19 = vmul.f32 %v2415_v59, %v2701_v25  ;;  %v1541_v16 = vmul.f32 %v2431_v57, %v2708_v49 }
  0xb8   : > { %1750 = vst.msk [vmem:[%s2673_s24 + $0x18] sm:$0x1f] %vm240_vm1, %v1724_v11  ;;  %v611_v53 = vadd.f32 %v3272_v23, %v2171_v47  ;;  %v848_v62 = vadd.f32 %v822_v7, %v768_v24  ;;  %v2723_v47 = vld [vmem:[#allocation2 + $0x360] sm:$0xff]  ;;  %v1621_v39 = vmul.f32 %v2458_v28, %v2704_v17  ;;  %v982_v5 = vmul.f32 %v2344_v46, %v955_v32  ;;  %v717_v40 = vld [vmem:[#allocation2 + $0x348] sm:$0x1f] }
  0xb9   : > { %1751 = vst.msk [vmem:[%s2673_s24 + $0x20] sm:$0xff] %vm238_vm0, %v1725_v20  ;;  %v1486_v50 = vadd.f32 %v1460_v37, %v1406_v27  ;;  %v1167_v13 = vadd.f32 %v1141_v0, %v1087_v48  ;;  %v823_v10 = vmul.f32 %v2598_v60, %v2318_v21  ;;  %v1701_v41 = vmul.f32 %v2465_v38, %v2723_v47  ;;  %v1195_v0 = vld [vmem:[#allocation2 + $0x158] sm:$0x1f]  ;;  %v3273_v27 = vld [vmem:[#allocation3_spill] sm:$0xff]  ;;  %v3274_v48 = vld [vmem:[#allocation21_spill] sm:$0xff] }
  0xba   : > { %v690_v42 = vadd.f32 %v664_v14, %v611_v53  ;;  %v928_v26 = vadd.f32 %v902_v63, %v848_v62  ;;  %v1062_v20 = vmul.f32 %v2374_v33, %v1035_v51  ;;  %v1142_v35 = vmul.f32 %v2363_v36, %v1115_v4  ;;  %v1355_v60 = vld [vmem:[#allocation2 + $0x358] sm:$0x1f]  ;;  %v1435_v62 = vld [vmem:[#allocation2 + $0x68] sm:$0x1f] }
  0xbb   : > { %v1566_v37 = vadd.f32 %v1540_v12, %v1486_v50  ;;  %v1247_v9 = vadd.f32 %v1221_v8, %v1167_v13  ;;  %v903_v8 = vmul.f32 %v1194_v52, %v2342_v44  ;;  %v983_v7 = vmul.f32 %v2344_v46, %v956_v18  ;;  %v797_v63 = vld [vmem:[#allocation2 + $0x58] sm:$0x1f]  ;;  %v1515_v13 = vld [vmem:[#allocation2 + $0x168] sm:$0x1f] }
  0xbc   : > { %v769_v11 = vadd.f32 %v743_v43, %v690_v42  ;;  %v1008_v55 = vadd.f32 %v982_v5, %v928_v26  ;;  %v612_v32 = vadd.f32 %v3274_v48, %v3273_v27  ;;  %v665_v23 = vmul.f32 %v2290_v3, %v638_v61  ;;  %v1595_v26 = vld [vmem:[#allocation2 + $0x268] sm:$0x1f]  ;;  %v877_v5 = vld [vmem:[#allocation2 + $0x158] sm:$0x1f] }
  0xbd   : > { %v1646_v56 = vadd.f32 %v1620_v54, %v1566_v37  ;;  %v1327_v29 = vadd.f32 %v1301_v15, %v1247_v9  ;;  %v744_v15 = vmul.f32 %v2357_v6, %v717_v40  ;;  %v1222_v52 = vmul.f32 %v2376_v34, %v1195_v0  ;;  %v1117_v48 = vld [vmem:[#allocation2 + $0x68] sm:$0x1f] }
  0xbe   : > { %v849_v12 = vadd.f32 %v823_v10, %v769_v11  ;;  %v1088_v24 = vadd.f32 %v1062_v20, %v1008_v55  ;;  %v1302_v50 = vmul.f32 %v2391_v1, %v1275_v22  ;;  %v691_v51 = vadd.f32 %v665_v23, %v612_v32  ;;  %v957_v10 = vld [vmem:[#allocation2 + $0x258] sm:$0x1f]  ;;  %v3275_v32 = vld [vmem:[#allocation4_spill] sm:$0xff] }
  0xbf   : > { %v1726_v53 = vadd.f32 %v1700_v2, %v1646_v56  ;;  %v1407_v14 = vadd.f32 %v1381_v45, %v1327_v29  ;;  %v1382_v42 = vmul.f32 %v2422_v30, %v1355_v60  ;;  %v1063_v45 = vmul.f32 %v2632_v58, %v2374_v33  ;;  %v1276_v56 = vld [vmem:[#allocation2 + $0x260] sm:$0xff]  ;;  %v3276_v23 = vld [vmem:[#allocation22_spill] sm:$0xff] }
  0xc0   : > { %v929_v54 = vadd.f32 %v903_v8, %v849_v12  ;;  %v1168_v43 = vadd.f32 %v1142_v35, %v1088_v24  ;;  %v1462_v37 = vmul.f32 %v2415_v59, %v1435_v62  ;;  %v770_v9 = vadd.f32 %v744_v15, %v691_v51  ;;  %v1037_v24 = vld [vmem:[#allocation2 + $0x358] sm:$0x1f]  ;;  %v1197_v51 = vld [vmem:[#allocation2 + $0x168] sm:$0x1f] }
  0xc1   : > { %1752 = vst.msk [vmem:[%s2673_s24 + $0x28] sm:$0x1f] %vm240_vm1, %v1726_v53  ;;  %v1487_v4 = vadd.f32 %v1461_v19, %v1407_v14  ;;  %v824_v11 = vmul.f32 %v2318_v21, %v797_v63  ;;  %v1542_v55 = vmul.f32 %v2431_v57, %v1515_v13  ;;  %v1143_v19 = vmul.f32 %v2701_v25, %v2363_v36 }
  0xc2   : > { %v1009_v2 = vadd.f32 %v983_v7, %v929_v54  ;;  %v1248_v61 = vadd.f32 %v1222_v52, %v1168_v43  ;;  %v1622_v40 = vmul.f32 %v2458_v28, %v1595_v26  ;;  %v904_v0 = vmul.f32 %v2342_v44, %v877_v5  ;;  %v1675_v7 = vld [vmem:[#allocation2 + $0x368] sm:$0x1f]  ;;  %v2766_v43 = vld [vmem:[#allocation2 + $0x70] sm:$0xff] }
  0xc3   : > { %v1567_v18 = vadd.f32 %v1541_v16, %v1487_v4  ;;  %v850_v29 = vadd.f32 %v824_v11, %v770_v9  ;;  %v1223_v8 = vmul.f32 %v2708_v49, %v2376_v34  ;;  %v984_v16 = vmul.f32 %v2344_v46, %v957_v10  ;;  %v2768_v52 = vld [vmem:[#allocation2 + $0x170] sm:$0xff] }
  0xc4   : > { %v1089_v20 = vadd.f32 %v1063_v45, %v1009_v2  ;;  %v1328_v35 = vadd.f32 %v1302_v50, %v1248_v61  ;;  %v613_v53 = vadd.f32 %v3276_v23, %v3275_v32  ;;  %v666_v14 = vmul.f32 %v2290_v3, %v2609_v31  ;;  %v1277_v45 = vld [vmem:[#allocation2 + $0x268] sm:$0x1f] }
  0xc5   : > { %v1647_v22 = vadd.f32 %v1621_v39, %v1567_v18  ;;  %v930_v27 = vadd.f32 %v904_v0, %v850_v29  ;;  %v1303_v54 = vmul.f32 %v2391_v1, %v1276_v56  ;;  %v745_v15 = vmul.f32 %v2632_v58, %v2357_v6 }
  0xc6   : > { %v1169_v12 = vadd.f32 %v1143_v19, %v1089_v20  ;;  %v1408_v60 = vadd.f32 %v1382_v42, %v1328_v35  ;;  %v1064_v13 = vmul.f32 %v2374_v33, %v1037_v24  ;;  %v692_v4 = vadd.f32 %v666_v14, %v613_v53  ;;  %v2784_v19 = vld [vmem:[#allocation2 + $0x270] sm:$0xff]  ;;  %v1357_v35 = vld [vmem:[#allocation2 + $0x368] sm:$0x1f]  ;;  %v3278_v24 = vld [vmem:[#allocation23_spill] sm:$0xff] }
  0xc7   : > { %v1727_v62 = vadd.f32 %v1701_v41, %v1647_v22  ;;  %v1010_v50 = vadd.f32 %v984_v16, %v930_v27  ;;  %v1702_v31 = vmul.f32 %v2465_v38, %v1675_v7  ;;  %v1383_v42 = vmul.f32 %v2723_v47, %v2422_v30  ;;  %v3277_v16 = vld [vmem:[#allocation5_spill] sm:$0xff] }
  0xc8   : > { %v1249_v39 = vadd.f32 %v1223_v8, %v1169_v12  ;;  %v1488_v63 = vadd.f32 %v1462_v37, %v1408_v60  ;;  %v1144_v58 = vmul.f32 %v2363_v36, %v1117_v48  ;;  %v771_v5 = vadd.f32 %v745_v15, %v692_v4  ;;  %v640_v37 = vld [vmem:[#allocation2 + $0x258] sm:$0x1f] }
  0xc9   : > { %1753 = vst.msk [vmem:[%s2673_s24 + $0x30] sm:$0xff] %vm238_vm0, %v1727_v62  ;;  %v1090_v2 = vadd.f32 %v1064_v13, %v1010_v50  ;;  %v825_v61 = vmul.f32 %v2701_v25, %v2318_v21  ;;  %v1463_v11 = vmul.f32 %v2415_v59, %v2766_v43  ;;  %v1543_v10 = vmul.f32 %v2431_v57, %v2768_v52  ;;  %v719_v25 = vld [vmem:[#allocation2 + $0x358] sm:$0x1f] }
  0xca   : > { %v1329_v41 = vadd.f32 %v1303_v54, %v1249_v39  ;;  %v1568_v26 = vadd.f32 %v1542_v55, %v1488_v63  ;;  %v1224_v18 = vmul.f32 %v2376_v34, %v1197_v51  ;;  %v905_v0 = vmul.f32 %v2708_v49, %v2342_v44  ;;  %v1437_v48 = vld [vmem:[#allocation2 + $0x78] sm:$0x1f] }
  0xcb   : > { %v1170_v55 = vadd.f32 %v1144_v58, %v1090_v2  ;;  %v851_v29 = vadd.f32 %v825_v61, %v771_v5  ;;  %v1304_v12 = vmul.f32 %v2391_v1, %v1277_v45  ;;  %v985_v8 = vmul.f32 %v1276_v56, %v2344_v46  ;;  %v799_v56 = vld [vmem:[#allocation2 + $0x68] sm:$0x1f]  ;;  %v1517_v54 = vld [vmem:[#allocation2 + $0x178] sm:$0x1f] }
  0xcc   : > { %v1409_v9 = vadd.f32 %v1383_v42, %v1329_v41  ;;  %v1648_v20 = vadd.f32 %v1622_v40, %v1568_v26  ;;  %v614_v60 = vadd.f32 %v3278_v24, %v3277_v16  ;;  %v2792_v40 = vld [vmem:[#allocation2 + $0x370] sm:$0xff]  ;;  %v667_v23 = vmul.f32 %v2290_v3, %v640_v37  ;;  %v1597_v15 = vld [vmem:[#allocation2 + $0x278] sm:$0x1f]  ;;  %v879_v42 = vld [vmem:[#allocation2 + $0x168] sm:$0x1f] }
  0xcd   : > { %v1250_v27 = vadd.f32 %v1224_v18, %v1170_v55  ;;  %v931_v32 = vadd.f32 %v905_v0, %v851_v29  ;;  %v1623_v49 = vmul.f32 %v2458_v28, %v2784_v19  ;;  %v1384_v14 = vmul.f32 %v2422_v30, %v1357_v35  ;;  %v1677_v18 = vld [vmem:[#allocation2 + $0x378] sm:$0x1f]  ;;  %v2813_v55 = vld [vmem:[#allocation2 + $0x80] sm:$0xff] }
  0xce   : > { %v1489_v22 = vadd.f32 %v1463_v11, %v1409_v9  ;;  %v1728_v7 = vadd.f32 %v1702_v31, %v1648_v20  ;;  %v746_v62 = vmul.f32 %v2357_v6, %v719_v25  ;;  %v1065_v50 = vmul.f32 %v2723_v47, %v2374_v33  ;;  %v959_v11 = vld [vmem:[#allocation2 + $0x268] sm:$0x1f] }
  0xcf   : > { %v1330_v39 = vadd.f32 %v1304_v12, %v1250_v27  ;;  %v1011_v63 = vadd.f32 %v985_v8, %v931_v32  ;;  %v693_v13 = vadd.f32 %v667_v23, %v614_v60  ;;  %v1703_v4 = vmul.f32 %v2465_v38, %v2792_v40  ;;  %v1039_v25 = vld [vmem:[#allocation2 + $0x368] sm:$0x1f]  ;;  %v2826_v27 = vld [vmem:[#allocation2 + $0x180] sm:$0xff] }
  0xd0   : > { %v1569_v53 = vadd.f32 %v1543_v10, %v1489_v22  ;;  %1754 = vst.msk [vmem:[%s2673_s24 + $0x38] sm:$0x1f] %vm240_vm1, %v1728_v7  ;;  %v1464_v31 = vmul.f32 %v2415_v59, %v1437_v48  ;;  %v1145_v41 = vmul.f32 %v2766_v43, %v2363_v36  ;;  %v826_v45 = vmul.f32 %v2318_v21, %v799_v56  ;;  %v3279_v22 = vld [vmem:[#allocation6_spill] sm:$0xff]  ;;  %v3280_v12 = vld [vmem:[#allocation24_spill] sm:$0xff]  ;;  %v2828_v48 = vld [vmem:[#allocation2 + $0x280] sm:$0xff] }
  0xd1   : > { %v1410_v58 = vadd.f32 %v1384_v14, %v1330_v39  ;;  %v1091_v26 = vadd.f32 %v1065_v50, %v1011_v63  ;;  %v772_v2 = vadd.f32 %v746_v62, %v693_v13  ;;  %v1544_v61 = vmul.f32 %v2431_v57, %v1517_v54  ;;  %v1119_v14 = vld [vmem:[#allocation2 + $0x78] sm:$0x1f]  ;;  %v2836_v39 = vld [vmem:[#allocation2 + $0x380] sm:$0xff]  ;;  %v642_v50 = vld [vmem:[#allocation2 + $0x268] sm:$0x1f] }
  0xd2   : > { %v1649_v51 = vadd.f32 %v1623_v49, %v1569_v53  ;;  %v1624_v37 = vmul.f32 %v2458_v28, %v1597_v15  ;;  %v1225_v9 = vmul.f32 %v2768_v52, %v2376_v34  ;;  %v906_v29 = vmul.f32 %v2342_v44, %v879_v42  ;;  %v1199_v63 = vld [vmem:[#allocation2 + $0x178] sm:$0x1f] }
  0xd3   : > { %v1490_v10 = vadd.f32 %v1464_v31, %v1410_v58  ;;  %v1171_v20 = vadd.f32 %v1145_v41, %v1091_v26  ;;  %v852_v35 = vadd.f32 %v826_v45, %v772_v2  ;;  %v1305_v0 = vmul.f32 %v2784_v19, %v2391_v1  ;;  %v1279_v2 = vld [vmem:[#allocation2 + $0x278] sm:$0x1f]  ;;  %v721_v45 = vld [vmem:[#allocation2 + $0x368] sm:$0x1f] }
  0xd4   : > { %v1729_v5 = vadd.f32 %v1703_v4, %v1649_v51  ;;  %v615_v8 = vadd.f32 %v3280_v12, %v3279_v22  ;;  %v668_v16 = vmul.f32 %v2290_v3, %v2704_v17  ;;  %v747_v24 = vmul.f32 %v2723_v47, %v2357_v6 }
  0xd5   : > { %v1570_v60 = vadd.f32 %v1544_v61, %v1490_v10  ;;  %v1251_v7 = vadd.f32 %v1225_v9, %v1171_v20  ;;  %v932_v32 = vadd.f32 %v906_v29, %v852_v35  ;;  %v986_v23 = vmul.f32 %v2344_v46, %v959_v11  ;;  %v1519_v20 = vld [vmem:[#allocation2 + $0x188] sm:$0x1f]  ;;  %v3281_v35 = vld [vmem:[#allocation7_spill] sm:$0xff]  ;;  %v3282_v29 = vld [vmem:[#allocation25_spill] sm:$0xff] }
  0xd6   : > { %1755 = vst.msk [vmem:[%s2673_s24 + $0x40] sm:$0xff] %vm238_vm0, %v1729_v5  ;;  %v1704_v53 = vmul.f32 %v2465_v38, %v1677_v18  ;;  %v1385_v49 = vmul.f32 %v2792_v40, %v2422_v30  ;;  %v1465_v17 = vmul.f32 %v2415_v59, %v2813_v55  ;;  %v694_v62 = vadd.f32 %v668_v16, %v615_v8  ;;  %v1439_v18 = vld [vmem:[#allocation2 + $0x88] sm:$0x1f] }
  0xd7   : > { %v1650_v47 = vadd.f32 %v1624_v37, %v1570_v60  ;;  %v1331_v56 = vadd.f32 %v1305_v0, %v1251_v7  ;;  %v1012_v54 = vadd.f32 %v986_v23, %v932_v32  ;;  %v1066_v15 = vmul.f32 %v2374_v33, %v1039_v25  ;;  %v1359_v37 = vld [vmem:[#allocation2 + $0x378] sm:$0x1f]  ;;  %v1599_v32 = vld [vmem:[#allocation2 + $0x288] sm:$0x1f] }
  0xd8   : > { %v1545_v13 = vmul.f32 %v2431_v57, %v2826_v27  ;;  %v1625_v51 = vmul.f32 %v2458_v28, %v2828_v48  ;;  %v773_v4 = vadd.f32 %v747_v24, %v694_v62  ;;  %v827_v31 = vmul.f32 %v2766_v43, %v2318_v21  ;;  %v1679_v23 = vld [vmem:[#allocation2 + $0x388] sm:$0x1f] }
  0xd9   : > { %v1730_v41 = vadd.f32 %v1704_v53, %v1650_v47  ;;  %v1411_v42 = vadd.f32 %v1385_v49, %v1331_v56  ;;  %v1092_v58 = vadd.f32 %v1066_v15, %v1012_v54  ;;  %v1146_v26 = vmul.f32 %v2363_v36, %v1119_v14  ;;  %v881_v47 = vld [vmem:[#allocation2 + $0x178] sm:$0x1f] }
  0xda   : > { %v1705_v5 = vmul.f32 %v2465_v38, %v2836_v39  ;;  %v1226_v61 = vmul.f32 %v2376_v34, %v1199_v63  ;;  %v853_v9 = vadd.f32 %v827_v31, %v773_v4  ;;  %v907_v11 = vmul.f32 %v2768_v52, %v2342_v44  ;;  %v801_v52 = vld [vmem:[#allocation2 + $0x78] sm:$0x1f] }
  0xdb   : > { %1756 = vst.msk [vmem:[%s2673_s24 + $0x48] sm:$0x1f] %vm240_vm1, %v1730_v41  ;;  %v1491_v43 = vadd.f32 %v1465_v17, %v1411_v42  ;;  %v1172_v10 = vadd.f32 %v1146_v26, %v1092_v58  ;;  %v616_v0 = vadd.f32 %v3282_v29, %v3281_v35  ;;  %v669_v25 = vmul.f32 %v2290_v3, %v642_v50  ;;  %v961_v41 = vld [vmem:[#allocation2 + $0x278] sm:$0x1f] }
  0xdc   : > { %v1306_v22 = vmul.f32 %v2391_v1, %v1279_v2  ;;  %v933_v12 = vadd.f32 %v907_v11, %v853_v9  ;;  %v987_v8 = vmul.f32 %v2784_v19, %v2344_v46  ;;  %v748_v16 = vmul.f32 %v2357_v6, %v721_v45  ;;  %v643_v19 = vld [vmem:[#allocation2 + $0x270] sm:$0xff]  ;;  %v3283_v9 = vld [vmem:[#allocation8_spill] sm:$0xff]  ;;  %v3284_v11 = vld [vmem:[#allocation26_spill] sm:$0xff] }
  0xdd   : > { %v1571_v24 = vadd.f32 %v1545_v13, %v1491_v43  ;;  %v1252_v60 = vadd.f32 %v1226_v61, %v1172_v10  ;;  %v1386_v7 = vmul.f32 %v2422_v30, %v1359_v37  ;;  %v695_v53 = vadd.f32 %v669_v25, %v616_v0  ;;  %v2873_v61 = vld [vmem:[#allocation2 + $0x90] sm:$0xff]  ;;  %v1041_v37 = vld [vmem:[#allocation2 + $0x378] sm:$0x1f] }
  0xde   : > { %v1466_v49 = vmul.f32 %v2415_v59, %v1439_v18  ;;  %v1546_v17 = vmul.f32 %v2431_v57, %v1519_v20  ;;  %v1013_v14 = vadd.f32 %v987_v8, %v933_v12  ;;  %v1067_v62 = vmul.f32 %v2792_v40, %v2374_v33  ;;  %v2889_v12 = vld [vmem:[#allocation2 + $0x290] sm:$0xff]  ;;  %v1121_v8 = vld [vmem:[#allocation2 + $0x88] sm:$0x1f] }
  0xdf   : > { %v1651_v56 = vadd.f32 %v1625_v51, %v1571_v24  ;;  %v1332_v54 = vadd.f32 %v1306_v22, %v1252_v60  ;;  %v774_v15 = vadd.f32 %v748_v16, %v695_v53  ;;  %v828_v63 = vmul.f32 %v2318_v21, %v801_v52 }
  0xe0   : > { %v1626_v50 = vmul.f32 %v2458_v28, %v1599_v32  ;;  %v1706_v13 = vmul.f32 %v2465_v38, %v1679_v23  ;;  %v1093_v4 = vadd.f32 %v1067_v62, %v1013_v14  ;;  %v1147_v31 = vmul.f32 %v2813_v55, %v2363_v36  ;;  %v1201_v32 = vld [vmem:[#allocation2 + $0x188] sm:$0x1f]  ;;  %v644_v14 = vld [vmem:[#allocation2 + $0x278] sm:$0x1f] }
  0xe1   : > { %v1731_v42 = vadd.f32 %v1705_v5, %v1651_v56  ;;  %v1412_v58 = vadd.f32 %v1386_v7, %v1332_v54  ;;  %v854_v26 = vadd.f32 %v828_v63, %v774_v15  ;;  %v908_v2 = vmul.f32 %v2342_v44, %v881_v47  ;;  %v2880_v5 = vld [vmem:[#allocation2 + $0x190] sm:$0xff]  ;;  %v723_v56 = vld [vmem:[#allocation2 + $0x378] sm:$0x1f] }
  0xe2   : > { %v1173_v51 = vadd.f32 %v1147_v31, %v1093_v4  ;;  %v1227_v45 = vmul.f32 %v2826_v27, %v2376_v34  ;;  %v617_v43 = vadd.f32 %v3284_v11, %v3283_v9  ;;  %v670_v10 = vmul.f32 %v2290_v3, %v643_v19  ;;  %v2901_v15 = vld [vmem:[#allocation2 + $0x390] sm:$0xff]  ;;  %v1281_v4 = vld [vmem:[#allocation2 + $0x288] sm:$0x1f]  ;;  %v1521_v9 = vld [vmem:[#allocation2 + $0x198] sm:$0x1f] }
  0xe3   : > { %1757 = vst.msk [vmem:[%s2673_s24 + $0x50] sm:$0xff] %vm238_vm0, %v1731_v42  ;;  %v1492_v18 = vadd.f32 %v1466_v49, %v1412_v58  ;;  %v934_v20 = vadd.f32 %v908_v2, %v854_v26  ;;  %v988_v35 = vmul.f32 %v2344_v46, %v961_v41  ;;  %v749_v29 = vmul.f32 %v2792_v40, %v2357_v6  ;;  %v1361_v31 = vld [vmem:[#allocation2 + $0x388] sm:$0x1f]  ;;  %v3285_v26 = vld [vmem:[#allocation9_spill] sm:$0xff]  ;;  %v3286_v2 = vld [vmem:[#allocation27_spill] sm:$0xff] }
  0xe4   : > { %v1253_v0 = vadd.f32 %v1227_v45, %v1173_v51  ;;  %v1307_v25 = vmul.f32 %v2828_v48, %v2391_v1  ;;  %v1387_v22 = vmul.f32 %v2836_v39, %v2422_v30  ;;  %v696_v16 = vadd.f32 %v670_v10, %v617_v43 }
  0xe5   : > { %v1572_v52 = vadd.f32 %v1546_v17, %v1492_v18  ;;  %v1467_v24 = vmul.f32 %v2415_v59, %v2873_v61  ;;  %v1014_v60 = vadd.f32 %v988_v35, %v934_v20  ;;  %v1068_v7 = vmul.f32 %v2374_v33, %v1041_v37  ;;  %v1441_v37 = vld [vmem:[#allocation2 + $0x98] sm:$0x1f]  ;;  %v803_v20 = vld [vmem:[#allocation2 + $0x88] sm:$0x1f] }
  0xe6   : > { %v1333_v40 = vadd.f32 %v1307_v25, %v1253_v0  ;;  %v1547_v23 = vmul.f32 %v2431_v57, %v2880_v5  ;;  %v775_v53 = vadd.f32 %v749_v29, %v696_v16  ;;  %v829_v49 = vmul.f32 %v2813_v55, %v2318_v21  ;;  %v1601_v29 = vld [vmem:[#allocation2 + $0x298] sm:$0x1f] }
  0xe7   : > { %v1652_v62 = vadd.f32 %v1626_v50, %v1572_v52  ;;  %v1627_v17 = vmul.f32 %v2458_v28, %v2889_v12  ;;  %v1094_v47 = vadd.f32 %v1068_v7, %v1014_v60  ;;  %v1148_v19 = vmul.f32 %v2363_v36, %v1121_v8  ;;  %v1681_v0 = vld [vmem:[#allocation2 + $0x398] sm:$0x1f]  ;;  %v883_v7 = vld [vmem:[#allocation2 + $0x188] sm:$0x1f] }
  0xe8   : > { %v1413_v54 = vadd.f32 %v1387_v22, %v1333_v40  ;;  %v1228_v63 = vmul.f32 %v2376_v34, %v1201_v32  ;;  %v855_v41 = vadd.f32 %v829_v49, %v775_v53  ;;  %v909_v55 = vmul.f32 %v2826_v27, %v2342_v44  ;;  %v645_v32 = vld [vmem:[#allocation2 + $0x280] sm:$0xff] }
  0xe9   : > { %v1732_v50 = vadd.f32 %v1706_v13, %v1652_v62  ;;  %v1174_v42 = vadd.f32 %v1148_v19, %v1094_v47  ;;  %v989_v58 = vmul.f32 %v2828_v48, %v2344_v46  ;;  %v618_v51 = vadd.f32 %v3286_v2, %v3285_v26 }
  0xea   : > { %v1493_v45 = vadd.f32 %v1467_v24, %v1413_v54  ;;  %v935_v11 = vadd.f32 %v909_v55, %v855_v41  ;;  %v671_v43 = vmul.f32 %v2290_v3, %v644_v14  ;;  %v750_v10 = vmul.f32 %v2357_v6, %v723_v56  ;;  %v963_v56 = vld [vmem:[#allocation2 + $0x288] sm:$0x1f]  ;;  %v2932_v55 = vld [vmem:[#allocation2 + $0x1a0] sm:$0xff] }
  0xeb   : > { %1758 = vst.msk [vmem:[%s2673_s24 + $0x58] sm:$0x1f] %vm240_vm1, %v1732_v50  ;;  %v1707_v27 = vmul.f32 %v2465_v38, %v2901_v15  ;;  %v1254_v13 = vadd.f32 %v1228_v63, %v1174_v42  ;;  %v1308_v18 = vmul.f32 %v2391_v1, %v1281_v4  ;;  %v1388_v48 = vmul.f32 %v2422_v30, %v1361_v31  ;;  %v2929_v4 = vld [vmem:[#allocation2 + $0xa0] sm:$0xff]  ;;  %v1043_v50 = vld [vmem:[#allocation2 + $0x388] sm:$0x1f]  ;;  %v3287_v42 = vld [vmem:[#allocation10_spill] sm:$0xff] }
  0xec   : > { %v1573_v35 = vadd.f32 %v1547_v23, %v1493_v45  ;;  %v1015_v25 = vadd.f32 %v989_v58, %v935_v11  ;;  %v1069_v22 = vmul.f32 %v2836_v39, %v2374_v33  ;;  %v697_v8 = vadd.f32 %v671_v43, %v618_v51  ;;  %v3288_v58 = vld [vmem:[#allocation28_spill] sm:$0xff] }
  0xed   : > { %v1334_v16 = vadd.f32 %v1308_v18, %v1254_v13  ;;  %v1468_v52 = vmul.f32 %v2415_v59, %v1441_v37  ;;  %v1548_v24 = vmul.f32 %v2431_v57, %v1521_v9  ;;  %v1149_v60 = vmul.f32 %v2873_v61, %v2363_v36  ;;  %v2943_v9 = vld [vmem:[#allocation2 + $0x2a0] sm:$0xff] }
  0xee   : > { %v1653_v40 = vadd.f32 %v1627_v17, %v1573_v35  ;;  %v1095_v53 = vadd.f32 %v1069_v22, %v1015_v25  ;;  %v776_v23 = vadd.f32 %v750_v10, %v697_v8  ;;  %v830_v49 = vmul.f32 %v2318_v21, %v803_v20  ;;  %v2950_v18 = vld [vmem:[#allocation2 + $0x3a0] sm:$0xff]  ;;  %v1203_v25 = vld [vmem:[#allocation2 + $0x198] sm:$0x1f]  ;;  %v646_v22 = vld [vmem:[#allocation2 + $0x288] sm:$0x1f] }
  0xef   : > { %v1414_v14 = vadd.f32 %v1388_v48, %v1334_v16  ;;  %v1628_v62 = vmul.f32 %v2458_v28, %v1601_v29  ;;  %v1708_v47 = vmul.f32 %v2465_v38, %v1681_v0  ;;  %v1229_v19 = vmul.f32 %v2880_v5, %v2376_v34 }
  0xf0   : > { %v1733_v54 = vadd.f32 %v1707_v27, %v1653_v40  ;;  %v1175_v63 = vadd.f32 %v1149_v60, %v1095_v53  ;;  %v856_v31 = vadd.f32 %v830_v49, %v776_v23  ;;  %v910_v17 = vmul.f32 %v2342_v44, %v883_v7  ;;  %v1283_v53 = vld [vmem:[#allocation2 + $0x298] sm:$0x1f]  ;;  %v725_v23 = vld [vmem:[#allocation2 + $0x388] sm:$0x1f] }
  0xf1   : > { %v1494_v41 = vadd.f32 %v1468_v52, %v1414_v14  ;;  %v619_v26 = vadd.f32 %v3288_v58, %v3287_v42  ;;  %v672_v2 = vmul.f32 %v2290_v3, %v645_v32  ;;  %v751_v51 = vmul.f32 %v2836_v39, %v2357_v6  ;;  %v1123_v39 = vld [vmem:[#allocation2 + $0x98] sm:$0x1f] }
  0xf2   : > { %1759 = vst.msk [vmem:[%s2673_s24 + $0x60] sm:$0xff] %vm238_vm0, %v1733_v54  ;;  %v1255_v45 = vadd.f32 %v1229_v19, %v1175_v63  ;;  %v1309_v37 = vmul.f32 %v2889_v12, %v2391_v1  ;;  %v936_v11 = vadd.f32 %v910_v17, %v856_v31  ;;  %v990_v43 = vmul.f32 %v2344_v46, %v963_v56  ;;  %v1443_v63 = vld [vmem:[#allocation2 + $0xa8] sm:$0x1f]  ;;  %v3289_v17 = vld [vmem:[#allocation11_spill] sm:$0xff] }
  0xf3   : > { %v1574_v10 = vadd.f32 %v1548_v24, %v1494_v41  ;;  %v1389_v27 = vmul.f32 %v2901_v15, %v2422_v30  ;;  %v1469_v13 = vmul.f32 %v2415_v59, %v2929_v4  ;;  %v698_v48 = vadd.f32 %v672_v2, %v619_v26  ;;  %v1523_v31 = vld [vmem:[#allocation2 + $0x1a8] sm:$0x1f]  ;;  %v3290_v41 = vld [vmem:[#allocation29_spill] sm:$0xff] }
  0xf4   : > { %v1335_v20 = vadd.f32 %v1309_v37, %v1255_v45  ;;  %v1549_v35 = vmul.f32 %v2431_v57, %v2932_v55  ;;  %v1016_v29 = vadd.f32 %v990_v43, %v936_v11  ;;  %v1070_v0 = vmul.f32 %v2374_v33, %v1043_v50  ;;  %v1603_v11 = vld [vmem:[#allocation2 + $0x2a8] sm:$0x1f] }
  0xf5   : > { %v1654_v8 = vadd.f32 %v1628_v62, %v1574_v10  ;;  %v1629_v16 = vmul.f32 %v2458_v28, %v2943_v9  ;;  %v777_v52 = vadd.f32 %v751_v51, %v698_v48  ;;  %v831_v24 = vmul.f32 %v2873_v61, %v2318_v21  ;;  %v1363_v62 = vld [vmem:[#allocation2 + $0x398] sm:$0x1f]  ;;  %v1683_v43 = vld [vmem:[#allocation2 + $0x3a8] sm:$0x1f] }
  0xf6   : > { %v1415_v60 = vadd.f32 %v1389_v27, %v1335_v20  ;;  %v1709_v7 = vmul.f32 %v2465_v38, %v2950_v18  ;;  %v1096_v32 = vadd.f32 %v1070_v0, %v1016_v29  ;;  %v1150_v40 = vmul.f32 %v2363_v36, %v1123_v39  ;;  %v885_v20 = vld [vmem:[#allocation2 + $0x198] sm:$0x1f] }
  0xf7   : > { %v1734_v49 = vadd.f32 %v1708_v47, %v1654_v8  ;;  %v1230_v14 = vmul.f32 %v2376_v34, %v1203_v25  ;;  %v857_v19 = vadd.f32 %v831_v24, %v777_v52  ;;  %v911_v56 = vmul.f32 %v2880_v5, %v2342_v44  ;;  %v805_v5 = vld [vmem:[#allocation2 + $0x98] sm:$0x1f] }
  0xf8   : > { %v1495_v54 = vadd.f32 %v1469_v13, %v1415_v60  ;;  %v1176_v61 = vadd.f32 %v1150_v40, %v1096_v32  ;;  %v620_v50 = vadd.f32 %v3290_v41, %v3289_v17  ;;  %v673_v42 = vmul.f32 %v2290_v3, %v646_v22  ;;  %v965_v60 = vld [vmem:[#allocation2 + $0x298] sm:$0x1f] }
  0xf9   : > { %1760 = vst.msk [vmem:[%s2673_s24 + $0x68] sm:$0x1f] %vm240_vm1, %v1734_v49  ;;  %v1310_v47 = vmul.f32 %v2391_v1, %v1283_v53  ;;  %v937_v58 = vadd.f32 %v911_v56, %v857_v19  ;;  %v991_v26 = vmul.f32 %v2889_v12, %v2344_v46  ;;  %v752_v2 = vmul.f32 %v2357_v6, %v725_v23  ;;  %v647_v12 = vld [vmem:[#allocation2 + $0x290] sm:$0xff]  ;;  %v3291_v19 = vld [vmem:[#allocation12_spill] sm:$0xff]  ;;  %v3292_v56 = vld [vmem:[#allocation30_spill] sm:$0xff] }
  0xfa   : > { %v1575_v51 = vadd.f32 %v1549_v35, %v1495_v54  ;;  %v1256_v45 = vadd.f32 %v1230_v14, %v1176_v61  ;;  %v1390_v37 = vmul.f32 %v2422_v30, %v1363_v62  ;;  %v699_v10 = vadd.f32 %v673_v42, %v620_v50  ;;  %v2987_v14 = vld [vmem:[#allocation2 + $0xb0] sm:$0xff]  ;;  %v1045_v62 = vld [vmem:[#allocation2 + $0x398] sm:$0x1f] }
  0xfb   : > { %v1470_v27 = vmul.f32 %v2415_v59, %v1443_v63  ;;  %v1550_v13 = vmul.f32 %v2431_v57, %v1523_v31  ;;  %v1017_v39 = vadd.f32 %v991_v26, %v937_v58  ;;  %v1071_v48 = vmul.f32 %v2901_v15, %v2374_v33  ;;  %v3003_v58 = vld [vmem:[#allocation2 + $0x2b0] sm:$0xff]  ;;  %v1125_v26 = vld [vmem:[#allocation2 + $0xa8] sm:$0x1f] }
  0xfc   : > { %v1655_v29 = vadd.f32 %v1629_v16, %v1575_v51  ;;  %v1336_v0 = vadd.f32 %v1310_v47, %v1256_v45  ;;  %v778_v25 = vadd.f32 %v752_v2, %v699_v10  ;;  %v832_v35 = vmul.f32 %v2318_v21, %v805_v5 }
  0xfd   : > { %v1630_v22 = vmul.f32 %v2458_v28, %v1603_v11  ;;  %v1710_v8 = vmul.f32 %v2465_v38, %v1683_v43  ;;  %v1097_v52 = vadd.f32 %v1071_v48, %v1017_v39  ;;  %v1151_v24 = vmul.f32 %v2929_v4, %v2363_v36  ;;  %v1205_v11 = vld [vmem:[#allocation2 + $0x1a8] sm:$0x1f]  ;;  %v648_v39 = vld [vmem:[#allocation2 + $0x298] sm:$0x1f] }
  0xfe   : > { %v1735_v32 = vadd.f32 %v1709_v7, %v1655_v29  ;;  %v1416_v40 = vadd.f32 %v1390_v37, %v1336_v0  ;;  %v858_v53 = vadd.f32 %v832_v35, %v778_v25  ;;  %v912_v23 = vmul.f32 %v2342_v44, %v885_v20  ;;  %v2994_v7 = vld [vmem:[#allocation2 + $0x1b0] sm:$0xff]  ;;  %v727_v29 = vld [vmem:[#allocation2 + $0x398] sm:$0x1f] }
  0xff   : > { %v1177_v16 = vadd.f32 %v1151_v24, %v1097_v52  ;;  %v1231_v49 = vmul.f32 %v2932_v55, %v2376_v34  ;;  %v621_v54 = vadd.f32 %v3292_v56, %v3291_v19  ;;  %v674_v61 = vmul.f32 %v2290_v3, %v647_v12  ;;  %v3015_v25 = vld [vmem:[#allocation2 + $0x3b0] sm:$0xff]  ;;  %v1285_v52 = vld [vmem:[#allocation2 + $0x2a8] sm:$0x1f]  ;;  %v1525_v19 = vld [vmem:[#allocation2 + $0x1b8] sm:$0x1f] }
 0x100   : > { %1761 = vst.msk [vmem:[%s2673_s24 + $0x70] sm:$0xff] %vm238_vm0, %v1735_v32  ;;  %v1496_v63 = vadd.f32 %v1470_v27, %v1416_v40  ;;  %v938_v31 = vadd.f32 %v912_v23, %v858_v53  ;;  %v992_v17 = vmul.f32 %v2344_v46, %v965_v60  ;;  %v753_v41 = vmul.f32 %v2901_v15, %v2357_v6  ;;  %v1365_v24 = vld [vmem:[#allocation2 + $0x3a8] sm:$0x1f]  ;;  %v3293_v53 = vld [vmem:[#allocation13_spill] sm:$0xff]  ;;  %v3294_v23 = vld [vmem:[#allocation31_spill] sm:$0xff] }
 0x101   : > { %v1257_v50 = vadd.f32 %v1231_v49, %v1177_v16  ;;  %v1311_v42 = vmul.f32 %v2943_v9, %v2391_v1  ;;  %v1391_v47 = vmul.f32 %v2950_v18, %v2422_v30  ;;  %v700_v2 = vadd.f32 %v674_v61, %v621_v54 }
 0x102   : > { %v1576_v5 = vadd.f32 %v1550_v13, %v1496_v63  ;;  %v1471_v51 = vmul.f32 %v2415_v59, %v2987_v14  ;;  %v1018_v45 = vadd.f32 %v992_v17, %v938_v31  ;;  %v1072_v37 = vmul.f32 %v2374_v33, %v1045_v62  ;;  %v1445_v62 = vld [vmem:[#allocation2 + $0xb8] sm:$0x1f]  ;;  %v807_v31 = vld [vmem:[#allocation2 + $0xa8] sm:$0x1f] }
 0x103   : > { %v1337_v15 = vadd.f32 %v1311_v42, %v1257_v50  ;;  %v1551_v43 = vmul.f32 %v2431_v57, %v2994_v7  ;;  %v779_v10 = vadd.f32 %v753_v41, %v700_v2  ;;  %v833_v27 = vmul.f32 %v2929_v4, %v2318_v21  ;;  %v1605_v41 = vld [vmem:[#allocation2 + $0x2b8] sm:$0x1f] }
 0x104   : > { %v1656_v48 = vadd.f32 %v1630_v22, %v1576_v5  ;;  %v1631_v13 = vmul.f32 %v2458_v28, %v3003_v58  ;;  %v1098_v20 = vadd.f32 %v1072_v37, %v1018_v45  ;;  %v1152_v12 = vmul.f32 %v2363_v36, %v1125_v26  ;;  %v1685_v50 = vld [vmem:[#allocation2 + $0x3b8] sm:$0x1f]  ;;  %v887_v37 = vld [vmem:[#allocation2 + $0x1a8] sm:$0x1f] }
 0x105   : > { %v1417_v0 = vadd.f32 %v1391_v47, %v1337_v15  ;;  %v1232_v35 = vmul.f32 %v2376_v34, %v1205_v11  ;;  %v859_v60 = vadd.f32 %v833_v27, %v779_v10  ;;  %v913_v4 = vmul.f32 %v2932_v55, %v2342_v44  ;;  %v649_v11 = vld [vmem:[#allocation2 + $0x2a0] sm:$0xff] }
 0x106   : > { %v1736_v22 = vadd.f32 %v1710_v8, %v1656_v48  ;;  %v1178_v32 = vadd.f32 %v1152_v12, %v1098_v20  ;;  %v993_v40 = vmul.f32 %v2943_v9, %v2344_v46  ;;  %v622_v16 = vadd.f32 %v3294_v23, %v3293_v53 }
 0x107   : > { %v1497_v49 = vadd.f32 %v1471_v51, %v1417_v0  ;;  %v939_v56 = vadd.f32 %v913_v4, %v859_v60  ;;  %v675_v54 = vmul.f32 %v2290_v3, %v648_v39  ;;  %v754_v61 = vmul.f32 %v2357_v6, %v727_v29  ;;  %v967_v29 = vld [vmem:[#allocation2 + $0x2a8] sm:$0x1f]  ;;  %v3046_v4 = vld [vmem:[#allocation2 + $0x1c0] sm:$0xff] }
 0x108   : > { %1762 = vst.msk [vmem:[%s2673_s24 + $0x78] sm:$0x1f] %vm240_vm1, %v1736_v22  ;;  %v1711_v55 = vmul.f32 %v2465_v38, %v3015_v25  ;;  %v1258_v8 = vadd.f32 %v1232_v35, %v1178_v32  ;;  %v1312_v63 = vmul.f32 %v2391_v1, %v1285_v52  ;;  %v1392_v9 = vmul.f32 %v2422_v30, %v1365_v24  ;;  %v3043_v52 = vld [vmem:[#allocation2 + $0xc0] sm:$0xff]  ;;  %v1047_v22 = vld [vmem:[#allocation2 + $0x3a8] sm:$0x1f]  ;;  %v3295_v32 = vld [vmem:[#allocation14_spill] sm:$0xff] }
 0x109   : > { %v1577_v17 = vadd.f32 %v1551_v43, %v1497_v49  ;;  %v1019_v42 = vadd.f32 %v993_v40, %v939_v56  ;;  %v1073_v47 = vmul.f32 %v2950_v18, %v2374_v33  ;;  %v701_v26 = vadd.f32 %v675_v54, %v622_v16  ;;  %v3296_v40 = vld [vmem:[#allocation32_spill] sm:$0xff] }
 0x10a   : > { %v1338_v2 = vadd.f32 %v1312_v63, %v1258_v8  ;;  %v1472_v5 = vmul.f32 %v2415_v59, %v1445_v62  ;;  %v1552_v51 = vmul.f32 %v2431_v57, %v1525_v19  ;;  %v1153_v45 = vmul.f32 %v2987_v14, %v2363_v36  ;;  %v3057_v19 = vld [vmem:[#allocation2 + $0x2c0] sm:$0xff] }
 0x10b   : > { %v1657_v15 = vadd.f32 %v1631_v13, %v1577_v17  ;;  %v1099_v10 = vadd.f32 %v1073_v47, %v1019_v42  ;;  %v780_v43 = vadd.f32 %v754_v61, %v701_v26  ;;  %v834_v27 = vmul.f32 %v2318_v21, %v807_v31  ;;  %v3064_v63 = vld [vmem:[#allocation2 + $0x3c0] sm:$0xff]  ;;  %v1207_v42 = vld [vmem:[#allocation2 + $0x1b8] sm:$0x1f]  ;;  %v650_v47 = vld [vmem:[#allocation2 + $0x2a8] sm:$0x1f] }
 0x10c   : > { %v1418_v39 = vadd.f32 %v1392_v9, %v1338_v2  ;;  %v1632_v48 = vmul.f32 %v2458_v28, %v1605_v41  ;;  %v1712_v20 = vmul.f32 %v2465_v38, %v1685_v50  ;;  %v1233_v12 = vmul.f32 %v2994_v7, %v2376_v34 }
 0x10d   : > { %v1737_v0 = vadd.f32 %v1711_v55, %v1657_v15  ;;  %v1179_v35 = vadd.f32 %v1153_v45, %v1099_v10  ;;  %v860_v24 = vadd.f32 %v834_v27, %v780_v43  ;;  %v914_v13 = vmul.f32 %v2342_v44, %v887_v37  ;;  %v1287_v10 = vld [vmem:[#allocation2 + $0x2b8] sm:$0x1f]  ;;  %v729_v43 = vld [vmem:[#allocation2 + $0x3a8] sm:$0x1f] }
 0x10e   : > { %v1498_v60 = vadd.f32 %v1472_v5, %v1418_v39  ;;  %v623_v53 = vadd.f32 %v3296_v40, %v3295_v32  ;;  %v676_v23 = vmul.f32 %v2290_v3, %v649_v11  ;;  %v755_v16 = vmul.f32 %v2950_v18, %v2357_v6  ;;  %v1127_v18 = vld [vmem:[#allocation2 + $0xb8] sm:$0x1f] }
 0x10f   : > { %1763 = vst.msk [vmem:[%s2673_s24 + $0x80] sm:$0xff] %vm238_vm0, %v1737_v0  ;;  %v1259_v49 = vadd.f32 %v1233_v12, %v1179_v35  ;;  %v1313_v62 = vmul.f32 %v3003_v58, %v2391_v1  ;;  %v940_v56 = vadd.f32 %v914_v13, %v860_v24  ;;  %v994_v54 = vmul.f32 %v2344_v46, %v967_v29  ;;  %v1447_v35 = vld [vmem:[#allocation2 + $0xc8] sm:$0x1f]  ;;  %v3297_v13 = vld [vmem:[#allocation15_spill] sm:$0xff] }
 0x110   : > { %v1578_v61 = vadd.f32 %v1552_v51, %v1498_v60  ;;  %v1393_v55 = vmul.f32 %v3015_v25, %v2422_v30  ;;  %v1473_v8 = vmul.f32 %v2415_v59, %v3043_v52  ;;  %v702_v9 = vadd.f32 %v676_v23, %v623_v53  ;;  %v1527_v24 = vld [vmem:[#allocation2 + $0x1c8] sm:$0x1f]  ;;  %v3298_v60 = vld [vmem:[#allocation33_spill] sm:$0xff] }
 0x111   : > { %v1339_v31 = vadd.f32 %v1313_v62, %v1259_v49  ;;  %v1553_v17 = vmul.f32 %v2431_v57, %v3046_v4  ;;  %v1020_v41 = vadd.f32 %v994_v54, %v940_v56  ;;  %v1074_v50 = vmul.f32 %v2374_v33, %v1047_v22  ;;  %v1607_v56 = vld [vmem:[#allocation2 + $0x2c8] sm:$0x1f] }
 0x112   : > { %v1658_v26 = vadd.f32 %v1632_v48, %v1578_v61  ;;  %v1633_v2 = vmul.f32 %v2458_v28, %v3057_v19  ;;  %v781_v5 = vadd.f32 %v755_v16, %v702_v9  ;;  %v835_v51 = vmul.f32 %v2987_v14, %v2318_v21  ;;  %v1367_v48 = vld [vmem:[#allocation2 + $0x3b8] sm:$0x1f]  ;;  %v1687_v54 = vld [vmem:[#allocation2 + $0x3c8] sm:$0x1f] }
 0x113   : > { %v1419_v45 = vadd.f32 %v1393_v55, %v1339_v31  ;;  %v1713_v37 = vmul.f32 %v2465_v38, %v3064_v63  ;;  %v1100_v11 = vadd.f32 %v1074_v50, %v1020_v41  ;;  %v1154_v15 = vmul.f32 %v2363_v36, %v1127_v18  ;;  %v889_v31 = vld [vmem:[#allocation2 + $0x1b8] sm:$0x1f] }
 0x114   : > { %v1738_v27 = vadd.f32 %v1712_v20, %v1658_v26  ;;  %v1234_v39 = vmul.f32 %v2376_v34, %v1207_v42  ;;  %v861_v12 = vadd.f32 %v835_v51, %v781_v5  ;;  %v915_v29 = vmul.f32 %v2994_v7, %v2342_v44  ;;  %v809_v7 = vld [vmem:[#allocation2 + $0xb8] sm:$0x1f] }
 0x115   : > { %v1499_v0 = vadd.f32 %v1473_v8, %v1419_v45  ;;  %v1180_v14 = vadd.f32 %v1154_v15, %v1100_v11  ;;  %v624_v22 = vadd.f32 %v3298_v60, %v3297_v13  ;;  %v677_v32 = vmul.f32 %v2290_v3, %v650_v47  ;;  %v969_v45 = vld [vmem:[#allocation2 + $0x2b8] sm:$0x1f] }
 0x116   : > { %1764 = vst.msk [vmem:[%s2673_s24 + $0x88] sm:$0x1f] %vm240_vm1, %v1738_v27  ;;  %v1314_v20 = vmul.f32 %v2391_v1, %v1287_v10  ;;  %v941_v40 = vadd.f32 %v915_v29, %v861_v12  ;;  %v995_v53 = vmul.f32 %v3003_v58, %v2344_v46  ;;  %v756_v23 = vmul.f32 %v2357_v6, %v729_v43  ;;  %v651_v58 = vld [vmem:[#allocation2 + $0x2b0] sm:$0xff]  ;;  %v3299_v12 = vld [vmem:[#allocation16_spill] sm:$0xff]  ;;  %v3300_v29 = vld [vmem:[#allocation34_spill] sm:$0xff] }
 0x117   : > { %v1579_v16 = vadd.f32 %v1553_v17, %v1499_v0  ;;  %v1260_v49 = vadd.f32 %v1234_v39, %v1180_v14  ;;  %v1394_v62 = vmul.f32 %v2422_v30, %v1367_v48  ;;  %v703_v61 = vadd.f32 %v677_v32, %v624_v22  ;;  %v3101_v39 = vld [vmem:[#allocation2 + $0xd0] sm:$0xff]  ;;  %v1049_v48 = vld [vmem:[#allocation2 + $0x3b8] sm:$0x1f] }
 0x118   : > { %v1474_v55 = vmul.f32 %v2415_v59, %v1447_v35  ;;  %v1554_v8 = vmul.f32 %v2431_v57, %v1527_v24  ;;  %v1021_v18 = vadd.f32 %v995_v53, %v941_v40  ;;  %v1075_v9 = vmul.f32 %v3015_v25, %v2374_v33  ;;  %v3117_v40 = vld [vmem:[#allocation2 + $0x2d0] sm:$0xff]  ;;  %v1129_v53 = vld [vmem:[#allocation2 + $0xc8] sm:$0x1f] }
 0x119   : > { %v1659_v41 = vadd.f32 %v1633_v2, %v1579_v16  ;;  %v1340_v50 = vadd.f32 %v1314_v20, %v1260_v49  ;;  %v782_v42 = vadd.f32 %v756_v23, %v703_v61  ;;  %v836_v17 = vmul.f32 %v2318_v21, %v809_v7 }
 0x11a   : > { %v1634_v47 = vmul.f32 %v2458_v28, %v1607_v56  ;;  %v1714_v26 = vmul.f32 %v2465_v38, %v1687_v54  ;;  %v1101_v5 = vadd.f32 %v1075_v9, %v1021_v18  ;;  %v1155_v51 = vmul.f32 %v3043_v52, %v2363_v36  ;;  %v1209_v56 = vld [vmem:[#allocation2 + $0x1c8] sm:$0x1f]  ;;  %v652_v18 = vld [vmem:[#allocation2 + $0x2b8] sm:$0x1f] }
 0x11b   : > { %v1739_v11 = vadd.f32 %v1713_v37, %v1659_v41  ;;  %v1420_v15 = vadd.f32 %v1394_v62, %v1340_v50  ;;  %v862_v10 = vadd.f32 %v836_v17, %v782_v42  ;;  %v916_v43 = vmul.f32 %v2342_v44, %v889_v31  ;;  %v3108_v37 = vld [vmem:[#allocation2 + $0x1d0] sm:$0xff]  ;;  %v731_v41 = vld [vmem:[#allocation2 + $0x3b8] sm:$0x1f] }
 0x11c   : > { %v1181_v2 = vadd.f32 %v1155_v51, %v1101_v5  ;;  %v1235_v27 = vmul.f32 %v3046_v4, %v2376_v34  ;;  %v625_v0 = vadd.f32 %v3300_v29, %v3299_v12  ;;  %v678_v14 = vmul.f32 %v2290_v3, %v651_v58  ;;  %v3129_v42 = vld [vmem:[#allocation2 + $0x3d0] sm:$0xff]  ;;  %v1289_v5 = vld [vmem:[#allocation2 + $0x2c8] sm:$0x1f]  ;;  %v1529_v12 = vld [vmem:[#allocation2 + $0x1d8] sm:$0x1f] }
 0x11d   : > { %1765 = vst.msk [vmem:[%s2673_s24 + $0x90] sm:$0xff] %vm238_vm0, %v1739_v11  ;;  %v1500_v35 = vadd.f32 %v1474_v55, %v1420_v15  ;;  %v942_v24 = vadd.f32 %v916_v43, %v862_v10  ;;  %v996_v13 = vmul.f32 %v2344_v46, %v969_v45  ;;  %v757_v60 = vmul.f32 %v3015_v25, %v2357_v6  ;;  %v1369_v51 = vld [vmem:[#allocation2 + $0x3c8] sm:$0x1f]  ;;  %v3301_v10 = vld [vmem:[#allocation17_spill] sm:$0xff]  ;;  %v3302_v43 = vld [vmem:[#allocation35_spill] sm:$0xff] }
 0x11e   : > { %v1261_v22 = vadd.f32 %v1235_v27, %v1181_v2  ;;  %v1315_v32 = vmul.f32 %v3057_v19, %v2391_v1  ;;  %v1395_v20 = vmul.f32 %v3064_v63, %v2422_v30  ;;  %v704_v23 = vadd.f32 %v678_v14, %v625_v0 }
 0x11f   : > { %v1580_v7 = vadd.f32 %v1554_v8, %v1500_v35  ;;  %v1475_v16 = vmul.f32 %v2415_v59, %v3101_v39  ;;  %v1022_v49 = vadd.f32 %v996_v13, %v942_v24  ;;  %v1076_v62 = vmul.f32 %v2374_v33, %v1049_v48  ;;  %v1449_v48 = vld [vmem:[#allocation2 + $0xd8] sm:$0x1f]  ;;  %v811_v24 = vld [vmem:[#allocation2 + $0xc8] sm:$0x1f] }
 0x120   : > { %v1341_v25 = vadd.f32 %v1315_v32, %v1261_v22  ;;  %v1555_v54 = vmul.f32 %v2431_v57, %v3108_v37  ;;  %v783_v61 = vadd.f32 %v757_v60, %v704_v23  ;;  %v837_v55 = vmul.f32 %v3043_v52, %v2318_v21  ;;  %v1609_v60 = vld [vmem:[#allocation2 + $0x2d8] sm:$0x1f] }
 0x121   : > { %v1660_v9 = vadd.f32 %v1634_v47, %v1580_v7  ;;  %v1635_v8 = vmul.f32 %v2458_v28, %v3117_v40  ;;  %v1102_v31 = vadd.f32 %v1076_v62, %v1022_v49  ;;  %v1156_v58 = vmul.f32 %v2363_v36, %v1129_v53  ;;  %v1689_v22 = vld [vmem:[#allocation2 + $0x3d8] sm:$0x1f]  ;;  %v891_v62 = vld [vmem:[#allocation2 + $0x1c8] sm:$0x1f] }
 0x122   : > { %v1421_v50 = vadd.f32 %v1395_v20, %v1341_v25  ;;  %v1236_v17 = vmul.f32 %v2376_v34, %v1209_v56  ;;  %v863_v45 = vadd.f32 %v837_v55, %v783_v61  ;;  %v917_v52 = vmul.f32 %v3046_v4, %v2342_v44  ;;  %v653_v56 = vld [vmem:[#allocation2 + $0x2c0] sm:$0xff] }
 0x123   : > { %v1740_v47 = vadd.f32 %v1714_v26, %v1660_v9  ;;  %v1182_v11 = vadd.f32 %v1156_v58, %v1102_v31  ;;  %v997_v15 = vmul.f32 %v3057_v19, %v2344_v46  ;;  %v626_v2 = vadd.f32 %v3302_v43, %v3301_v10 }
 0x124   : > { %v1501_v27 = vadd.f32 %v1475_v16, %v1421_v50  ;;  %v943_v29 = vadd.f32 %v917_v52, %v863_v45  ;;  %v679_v0 = vmul.f32 %v2290_v3, %v652_v18  ;;  %v758_v14 = vmul.f32 %v2357_v6, %v731_v41  ;;  %v971_v41 = vld [vmem:[#allocation2 + $0x2c8] sm:$0x1f]  ;;  %v1450_v45 = vld [vmem:[#allocation2 + $0xe0] sm:$0xff] }
 0x125   : > { %1766 = vst.msk [vmem:[%s2673_s24 + $0x98] sm:$0x1f] %vm240_vm1, %v1740_v47  ;;  %v1715_v4 = vmul.f32 %v2465_v38, %v3129_v42  ;;  %v1262_v26 = vadd.f32 %v1236_v17, %v1182_v11  ;;  %v1316_v35 = vmul.f32 %v2391_v1, %v1289_v5  ;;  %v1396_v19 = vmul.f32 %v2422_v30, %v1369_v51  ;;  %v1051_v52 = vld [vmem:[#allocation2 + $0x3c8] sm:$0x1f]  ;;  %v3303_v47 = vld [vmem:[#allocation18_spill] sm:$0xff] }
 0x126   : > { %v1581_v13 = vadd.f32 %v1555_v54, %v1501_v27  ;;  %v1023_v32 = vadd.f32 %v997_v15, %v943_v29  ;;  %v1077_v20 = vmul.f32 %v3064_v63, %v2374_v33  ;;  %v705_v53 = vadd.f32 %v679_v0, %v626_v2  ;;  %v3304_v11 = vld [vmem:[#allocation36_spill] sm:$0xff] }
 0x127   : > { %v1342_v23 = vadd.f32 %v1316_v35, %v1262_v26  ;;  %v1476_v7 = vmul.f32 %v2415_v59, %v1449_v48  ;;  %v1556_v16 = vmul.f32 %v2431_v57, %v1529_v12  ;;  %v1157_v49 = vmul.f32 %v3101_v39, %v2363_v36  ;;  %v1530_v48 = vld [vmem:[#allocation2 + $0x1e0] sm:$0xff]  ;;  %v1131_v26 = vld [vmem:[#allocation2 + $0xd8] sm:$0x1f] }
 0x128   : > { %v1661_v25 = vadd.f32 %v1635_v8, %v1581_v13  ;;  %v1103_v61 = vadd.f32 %v1077_v20, %v1023_v32  ;;  %v784_v54 = vadd.f32 %v758_v14, %v705_v53  ;;  %v838_v55 = vmul.f32 %v2318_v21, %v811_v24  ;;  %v654_v32 = vld [vmem:[#allocation2 + $0x2c8] sm:$0x1f] }
 0x129   : > { %v1422_v18 = vadd.f32 %v1396_v19, %v1342_v23  ;;  %v1636_v9 = vmul.f32 %v2458_v28, %v1609_v60  ;;  %v1716_v31 = vmul.f32 %v2465_v38, %v1689_v22  ;;  %v1237_v58 = vmul.f32 %v3108_v37, %v2376_v34  ;;  %v1211_v22 = vld [vmem:[#allocation2 + $0x1d8] sm:$0x1f] }
 0x12a   : > { %v1741_v50 = vadd.f32 %v1715_v4, %v1661_v25  ;;  %v1183_v17 = vadd.f32 %v1157_v49, %v1103_v61  ;;  %v864_v5 = vadd.f32 %v838_v55, %v784_v54  ;;  %v918_v51 = vmul.f32 %v2342_v44, %v891_v62  ;;  %v1610_v4 = vld [vmem:[#allocation2 + $0x2e0] sm:$0xff]  ;;  %v733_v25 = vld [vmem:[#allocation2 + $0x3c8] sm:$0x1f] }
 0x12b   : > { %v1502_v8 = vadd.f32 %v1476_v7, %v1422_v18  ;;  %v627_v15 = vadd.f32 %v3304_v11, %v3303_v47  ;;  %v680_v10 = vmul.f32 %v2290_v3, %v653_v56  ;;  %v759_v43 = vmul.f32 %v3064_v63, %v2357_v6  ;;  %v1291_v56 = vld [vmem:[#allocation2 + $0x2d8] sm:$0x1f] }
 0x12c   : > { %1767 = vst.msk [vmem:[%s2673_s24 + $0xa0] sm:$0xff] %vm238_vm0, %v1741_v50  ;;  %v1263_v2 = vadd.f32 %v1237_v58, %v1183_v17  ;;  %v1317_v27 = vmul.f32 %v3117_v40, %v2391_v1  ;;  %v944_v12 = vadd.f32 %v918_v51, %v864_v5  ;;  %v998_v29 = vmul.f32 %v2344_v46, %v971_v41  ;;  %v1690_v41 = vld [vmem:[#allocation2 + $0x3e0] sm:$0xff]  ;;  %v1371_v50 = vld [vmem:[#allocation2 + $0x3d8] sm:$0x1f]  ;;  %v3306_v5 = vld [vmem:[#allocation37_spill] sm:$0xff] }
 0x12d   : > { %v1582_v0 = vadd.f32 %v1556_v16, %v1502_v8  ;;  %v1397_v14 = vmul.f32 %v3129_v42, %v2422_v30  ;;  %v706_v35 = vadd.f32 %v680_v10, %v627_v15  ;;  %v839_v63 = vmul.f32 %v3101_v39, %v2318_v21  ;;  %v3305_v17 = vld [vmem:[#allocation19_spill] sm:$0xff]  ;;  %v893_v11 = vld [vmem:[#allocation2 + $0x1d8] sm:$0x1f] }
 0x12e   : > { %v1343_v19 = vadd.f32 %v1317_v27, %v1263_v2  ;;  %v1477_v24 = vmul.f32 %v2415_v59, %v1450_v45  ;;  %v1024_v13 = vadd.f32 %v998_v29, %v944_v12  ;;  %v1078_v60 = vmul.f32 %v2374_v33, %v1051_v52 }
 0x12f   : > { %v1662_v20 = vadd.f32 %v1636_v9, %v1582_v0  ;;  %v1557_v53 = vmul.f32 %v2431_v57, %v1530_v48  ;;  %v785_v23 = vadd.f32 %v759_v43, %v706_v35  ;;  %v919_v7 = vmul.f32 %v3108_v37, %v2342_v44  ;;  %v813_v9 = vld [vmem:[#allocation2 + $0xd8] sm:$0x1f]  ;;  %v1451_v43 = vld [vmem:[#allocation2 + $0xe8] sm:$0x1f] }
 0x130   : > { %v1423_v16 = vadd.f32 %v1397_v14, %v1343_v19  ;;  %v1637_v49 = vmul.f32 %v2458_v28, %v1610_v4  ;;  %v1104_v39 = vadd.f32 %v1078_v60, %v1024_v13  ;;  %v1158_v62 = vmul.f32 %v2363_v36, %v1131_v26  ;;  %v973_v14 = vld [vmem:[#allocation2 + $0x2d8] sm:$0x1f]  ;;  %v1531_v19 = vld [vmem:[#allocation2 + $0x1e8] sm:$0x1f] }
 0x131   : > { %v1742_v61 = vadd.f32 %v1716_v31, %v1662_v20  ;;  %v1238_v54 = vmul.f32 %v2376_v34, %v1211_v22  ;;  %v865_v55 = vadd.f32 %v839_v63, %v785_v23  ;;  %v999_v18 = vmul.f32 %v3117_v40, %v2344_v46  ;;  %v1053_v13 = vld [vmem:[#allocation2 + $0x3d8] sm:$0x1f] }
 0x132   : > { %v1503_v58 = vadd.f32 %v1477_v24, %v1423_v16  ;;  %v1184_v37 = vadd.f32 %v1158_v62, %v1104_v39  ;;  %v628_v51 = vadd.f32 %v3306_v5, %v3305_v17  ;;  %v681_v8 = vmul.f32 %v2290_v3, %v654_v32  ;;  %v1691_v62 = vld [vmem:[#allocation2 + $0x3e8] sm:$0x1f]  ;;  %v1612_v17 = vld [vmem:[#allocation2 + $0x2f0] sm:$0xff] }
 0x133   : > { %1768 = vst.msk [vmem:[%s2673_s24 + $0xa8] sm:$0x1f] %vm240_vm1, %v1742_v61  ;;  %v1318_v31 = vmul.f32 %v2391_v1, %v1291_v56  ;;  %v945_v52 = vadd.f32 %v919_v7, %v865_v55  ;;  %v1079_v47 = vmul.f32 %v3129_v42, %v2374_v33  ;;  %v760_v40 = vmul.f32 %v2357_v6, %v733_v25  ;;  %v1133_v7 = vld [vmem:[#allocation2 + $0xe8] sm:$0x1f]  ;;  %v1532_v55 = vld [vmem:[#allocation2 + $0x1f0] sm:$0xff] }
 0x134   : > { %v1583_v15 = vadd.f32 %v1557_v53, %v1503_v58  ;;  %v1264_v10 = vadd.f32 %v1238_v54, %v1184_v37  ;;  %v707_v2 = vadd.f32 %v681_v8, %v628_v51  ;;  %v840_v27 = vmul.f32 %v2318_v21, %v813_v9  ;;  %v1213_v61 = vld [vmem:[#allocation2 + $0x1e8] sm:$0x1f] }
 0x135   : > { %v1717_v12 = vmul.f32 %v2465_v38, %v1690_v41  ;;  %v1398_v3 = vmul.f32 %v2422_v30, %v1371_v50  ;;  %v1025_v29 = vadd.f32 %v999_v18, %v945_v52  ;;  %v1159_v0 = vmul.f32 %v1450_v45, %v2363_v36  ;;  %v1611_v45 = vld [vmem:[#allocation2 + $0x2e8] sm:$0x1f] }
 0x136   : > { %v1663_v26 = vadd.f32 %v1637_v49, %v1583_v15  ;;  %v1344_v35 = vadd.f32 %v1318_v31, %v1264_v10  ;;  %v786_v42 = vadd.f32 %v760_v40, %v707_v2  ;;  %v920_v6 = vmul.f32 %v2342_v44, %v893_v11  ;;  %v1452_v49 = vld [vmem:[#allocation2 + $0xf0] sm:$0xff]  ;;  %v1293_v37 = vld [vmem:[#allocation2 + $0x2e8] sm:$0x1f]  ;;  %v1453_v10 = vld [vmem:[#allocation2 + $0xf8] sm:$0x1f] }
 0x137   : > { %v1478_v63 = vmul.f32 %v2415_v59, %v1451_v43  ;;  %v1105_v24 = vadd.f32 %v1079_v47, %v1025_v29  ;;  %v1239_v21 = vmul.f32 %v1530_v48, %v2376_v34  ;;  %v1000_v20 = vmul.f32 %v2344_v46, %v973_v14  ;;  %v1373_v31 = vld [vmem:[#allocation2 + $0x3e8] sm:$0x1f]  ;;  %v1692_v47 = vld [vmem:[#allocation2 + $0x3f0] sm:$0xff] }
 0x138   : > { %v1743_v60 = vadd.f32 %v1717_v12, %v1663_v26  ;;  %v1424_v22 = vadd.f32 %v1398_v3, %v1344_v35  ;;  %v866_v32 = vadd.f32 %v840_v27, %v786_v42  ;;  %v1319_v23 = vmul.f32 %v1610_v4, %v2391_v1  ;;  %v1533_v12 = vld [vmem:[#allocation2 + $0x1f8] sm:$0x1f] }
 0x139   : > { %v1185_v53 = vadd.f32 %v1159_v0, %v1105_v24  ;;  %v1558_v16 = vmul.f32 %v2431_v57, %v1531_v19  ;;  %v1080_v48 = vmul.f32 %v2374_v33, %v1053_v13  ;;  %v1399_v25 = vmul.f32 %v1690_v41, %v2422_v30  ;;  %v1693_v42 = vld [vmem:[#allocation2 + $0x3f8] sm:$0x1f] }
 0x13a   : > { %1769 = vst.msk [vmem:[%s2673_s24 + $0xb0] sm:$0xff] %vm238_vm0, %v1743_v60  ;;  %v1504_v44 = vadd.f32 %v1478_v63, %v1424_v22  ;;  %v946_v39 = vadd.f32 %v920_v6, %v866_v32  ;;  %v1638_v54 = vmul.f32 %v2458_v28, %v1611_v45  ;;  %v1160_v18 = vmul.f32 %v2363_v36, %v1133_v7 }
 0x13b   : > { %v1265_v56 = vadd.f32 %v1239_v21, %v1185_v53  ;;  %v1479_v58 = vmul.f32 %v2415_v59, %v1452_v49  ;;  %v1718_v33 = vmul.f32 %v2465_v38, %v1691_v62  ;;  %v1240_v41 = vmul.f32 %v2376_v34, %v1213_v61 }
 0x13c   : > { %v1584_v46 = vadd.f32 %v1558_v16, %v1504_v44  ;;  %v1026_v4 = vadd.f32 %v1000_v20, %v946_v39  ;;  %v1559_v8 = vmul.f32 %v2431_v57, %v1532_v55  ;;  %v1320_v36 = vmul.f32 %v2391_v1, %v1293_v37  ;;  %v1613_v1 = vld [vmem:[#allocation2 + $0x2f8] sm:$0x1f] }
 0x13d   : > { %v1345_v9 = vadd.f32 %v1319_v23, %v1265_v56  ;;  %v1639_v15 = vmul.f32 %v2458_v28, %v1612_v17  ;;  %v1400_v2 = vmul.f32 %v2422_v30, %v1373_v31  ;;  %v1719_v27 = vmul.f32 %v2465_v38, %v1692_v47 }
 0x13e   : > { %v1664_v50 = vadd.f32 %v1638_v54, %v1584_v46  ;;  %v1106_v5 = vadd.f32 %v1080_v48, %v1026_v4  ;;  %v1480_v29 = vmul.f32 %v2415_v59, %v1453_v10  ;;  %v1560_v26 = vmul.f32 %v2431_v57, %v1533_v12 }
 0x13f   : > { %v1425_v51 = vadd.f32 %v1399_v25, %v1345_v9  ;;  %v1640_v63 = vmul.f32 %v2458_v28, %v1613_v1  ;;  %v1720_v19 = vmul.f32 %v2465_v38, %v1693_v42 }
 0x140   : > { %v1744_v52 = vadd.f32 %v1718_v33, %v1664_v50  ;;  %v1186_v40 = vadd.f32 %v1160_v18, %v1106_v5 }
 0x141   : > { %v1505_v11 = vadd.f32 %v1479_v58, %v1425_v51 }
 0x142   : > { %1770 = vst.msk [vmem:[%s2673_s24 + $0xb8] sm:$0x1f] %vm240_vm1, %v1744_v52  ;;  %v1266_v43 = vadd.f32 %v1240_v41, %v1186_v40 }
 0x143   : > { %v1585_v34 = vadd.f32 %v1559_v8, %v1505_v11 }
 0x144   : > { %v1346_v3 = vadd.f32 %v1320_v36, %v1266_v43 }
 0x145   : > { %v1665_v0 = vadd.f32 %v1639_v15, %v1585_v34 }
 0x146   : > { %v1426_v14 = vadd.f32 %v1400_v2, %v1346_v3 }
 0x147   : > { %v1745_v35 = vadd.f32 %v1719_v27, %v1665_v0 }
 0x148   : > { %v1506_v6 = vadd.f32 %v1480_v29, %v1426_v14 }
 0x149   : > { %1771 = vst.msk [vmem:[%s2673_s24 + $0xc0] sm:$0xff] %vm238_vm0, %v1745_v35 }
 0x14a   : > { %v1586_v30 = vadd.f32 %v1560_v26, %v1506_v6 }
 0x14c   : > { %v1666_v24 = vadd.f32 %v1640_v63, %v1586_v30 }
 0x14e   : > { %v1746_v21 = vadd.f32 %v1720_v19, %v1666_v24 }
 0x150   : > { %1772 = vst.msk [vmem:[%s2673_s24 + $0xc8] sm:$0x1f] %vm240_vm1, %v1746_v21 }
 0x151 PF: > { %s12_s11 = sadd.s32 1, %s1935_s11   ;;  %s3307_s9 = smov %s1931_s10 }
 0x152   : > { %p9_p5 = scmp.ge.s32.totalorder %s12_s11, 4   ;;  %s3308_s10 = smov %s3310_s12 }
 0x154   :  { %11 = sbr.rel (!%p9_p5) target bundleno = 2 (0x2), region = 76 }

</bundles_post_ra>
